<compile_context>
chip_gen: v5e
topology: v5e:2x2
jax: 0.10.0
libtpu: 0.0.40
codegen_flags: <defaults>
</compile_context>

<pallas_src>
import functools

import jax
import jax.numpy as jnp
from jax.experimental import pallas as pl
from jax.experimental.pallas import tpu as pltpu


# ----------------------------------------------------------------------------
# Fused kernel: conv1x1 + ReLU (VPU) -> flatten -> Linear -> BN -> ReLU -> Linear
# ----------------------------------------------------------------------------
def _simclr_fused_kernel(x_ref, wc_ref, bc_ref, w1_ref, g_ref, beta_ref,
                         w2_ref, b2_ref, o_ref, *, cin, cout, hw):
    # ---- backbone: pointwise conv + ReLU as VPU broadcast FMAs --------------
    # x_ref is (B, Cin*H*W); channel ci occupies the lane-contiguous slab
    # [ci*hw, (ci+1)*hw).  Conv weights/bias are scalars in SMEM.
    pieces = []
    for co in range(cout):
        acc = x_ref[:, 0:hw] * wc_ref[co * cin + 0]
        for ci in range(1, cin):
            acc = acc + x_ref[:, ci * hw:(ci + 1) * hw] * wc_ref[co * cin + ci]
        acc = acc + bc_ref[co]
        pieces.append(jnp.maximum(acc, 0.0))
    # Lane-concatenation reproduces PyTorch flatten(start_dim=1) of the NCHW
    # conv output: index = co*H*W + h*W + w.  No transpose / relayout needed.
    feats = jnp.concatenate(pieces, axis=-1).astype(jnp.bfloat16)  # (B, cout*hw)

    # ---- projection head ----------------------------------------------------
    # Linear(in, hidden, bias=False): bf16 MXU inputs, f32 accumulation.
    h = jnp.dot(feats, w1_ref[...], preferred_element_type=jnp.float32)

    # BatchNorm1d, training mode: batch mean / biased batch variance, eps=1e-5.
    mean = jnp.mean(h, axis=0, keepdims=True)
    d = h - mean                                        # reused for var and hn
    var = jnp.mean(d * d, axis=0, keepdims=True)
    hn = d * jax.lax.rsqrt(var + 1e-5) * g_ref[...] + beta_ref[...]

    r = jnp.maximum(hn, 0.0).astype(jnp.bfloat16)

    # Linear(hidden, out, bias=True)
    z = jnp.dot(r, w2_ref[...], preferred_element_type=jnp.float32) + b2_ref[...]
    o_ref[...] = z.astype(o_ref.dtype)                  # lane-dense (B, 128) store


def simclr_forward(x_nchw, params):
    B, Cin, H, W = x_nchw.shape
    HW = H * W
    Cout = params["conv_b"].shape[0]
    out_size = params["w2"].shape[1]

    # NCHW -> (B, Cin*H*W) is a free reshape (contiguous), no transpose.
    x_flat = x_nchw.reshape(B, Cin * HW)

    vmem = pl.BlockSpec(memory_space=pltpu.MemorySpace.VMEM)
    smem = pl.BlockSpec(memory_space=pltpu.MemorySpace.SMEM)

    kernel = functools.partial(_simclr_fused_kernel, cin=Cin, cout=Cout, hw=HW)
    return pl.pallas_call(
        kernel,
        out_shape=jax.ShapeDtypeStruct((B, out_size), jnp.float32),
        in_specs=[vmem, smem, smem, vmem, vmem, vmem, vmem, vmem],
        out_specs=vmem,
        compiler_params=pltpu.CompilerParams(
            vmem_limit_bytes=32 * 1024 * 1024),
    )(
        x_flat,
        params["conv_w"].reshape(-1),   # (Cout*Cin,) scalars -> SMEM
        params["conv_b"],               # (Cout,)    scalars -> SMEM
        params["w1"],                   # (in_size, hidden) bf16
        params["bn_gamma"],             # (1, hidden) f32
        params["bn_beta"],              # (1, hidden) f32
        params["w2"],                   # (hidden, out) bf16
        params["b2"],                   # (1, out) f32
    )


# ----------------------------------------------------------------------------
# References
# ----------------------------------------------------------------------------
def reference_forward(x_nchw, params):
    """Pure-jnp reference mirroring the kernel math (bf16 matmul inputs)."""
    B = x_nchw.shape[0]
    y = jnp.einsum("oc,bchw->bohw", params["conv_w"], x_nchw)
    y = y + params["conv_b"][None, :, None, None]
    feats = jnp.maximum(y, 0.0).reshape(B, -1)
    h = jnp.dot(feats.astype(jnp.bfloat16), params["w1"],
                preferred_element_type=jnp.float32)
    mean = h.mean(axis=0, keepdims=True)
    d = h - mean
    var = (d * d).mean(axis=0, keepdims=True)
    hn = d * jax.lax.rsqrt(var + 1e-5) * params["bn_gamma"] + params["bn_beta"]
    r = jnp.maximum(hn, 0.0).astype(jnp.bfloat16)
    return jnp.dot(r, params["w2"], preferred_element_type=jnp.float32) + params["b2"]


def reference_forward_f32(x_nchw, params):
    """Full-f32 reference (original module semantics; weights upcast from bf16)."""
    B = x_nchw.shape[0]
    y = jnp.einsum("oc,bchw->bohw", params["conv_w"], x_nchw)
    y = y + params["conv_b"][None, :, None, None]
    feats = jnp.maximum(y, 0.0).reshape(B, -1)
    h = feats @ params["w1"].astype(jnp.float32)
    mean = h.mean(axis=0, keepdims=True)
    d = h - mean
    var = (d * d).mean(axis=0, keepdims=True)
    hn = d / jnp.sqrt(var + 1e-5) * params["bn_gamma"] + params["bn_beta"]
    r = jnp.maximum(hn, 0.0)
    return r @ params["w2"].astype(jnp.float32) + params["b2"]


def init_params(key, cin, cout, in_size, hidden, out_size):
    k = jax.random.split(key, 5)
    return {
        "conv_w": jax.random.normal(k[0], (cout, cin), jnp.float32) * 0.2,
        "conv_b": jax.random.normal(k[1], (cout,), jnp.float32) * 0.05,
        "w1": (jax.random.normal(k[2], (in_size, hidden), jnp.float32)
               / jnp.sqrt(in_size)).astype(jnp.bfloat16),
        "bn_gamma": jnp.ones((1, hidden), jnp.float32),
        "bn_beta": jnp.zeros((1, hidden), jnp.float32),
        "w2": (jax.random.normal(k[3], (hidden, out_size), jnp.float32)
               / jnp.sqrt(hidden)).astype(jnp.bfloat16),
        "b2": jax.random.normal(k[4], (1, out_size), jnp.float32) * 0.05,
    }


if __name__ == "__main__":
    # batch=8, in channels=4, spatial=16x16, backbone channels=4
    # -> in_size = 4*16*16 = 1024, hidden_size = 512, out_size = 128
    #    (matching the module's defaults in_size=1024, hidden_size=512, out_size=128)
    B, Cin, H, W = 8, 4, 16, 16
    Cout = 4
    in_size = Cout * H * W
    hidden, out_size = 512, 128

    key = jax.random.PRNGKey(0)
    kx, kp = jax.random.split(key)
    x = jax.random.normal(kx, (B, Cin, H, W), jnp.float32)
    params = init_params(kp, Cin, Cout, in_size, hidden, out_size)

    z = jax.block_until_ready(simclr_forward(x, params))
    assert z.shape == (B, out_size), z.shape

    # Tight check vs a reference that mirrors the kernel's bf16-matmul math.
    z_ref = reference_forward(x, params)
    assert jnp.allclose(z, z_ref, atol=1e-2, rtol=1e-2), "mismatch vs bf16 reference"

    # Loose sanity check vs the full-f32 module semantics (bf16 matmul inputs only
    # perturb the result slightly).
    z_f32 = reference_forward_f32(x, params)
    assert float(jnp.max(jnp.abs(z - z_f32))) < 0.25, "drift vs f32 reference"

    print("KERNEL_OK")
</pallas_src>

<mosaic_0001>
module attributes {stable_mosaic.version = 11 : i64} {
  func.func @_simclr_fused_kernel(%arg0: memref<8x1024xf32, #tpu.memory_space<vmem>>, %arg1: memref<16xf32, #tpu.memory_space<smem>>, %arg2: memref<4xf32, #tpu.memory_space<smem>>, %arg3: memref<1024x512xbf16, #tpu.memory_space<vmem>>, %arg4: memref<1x512xf32, #tpu.memory_space<vmem>>, %arg5: memref<1x512xf32, #tpu.memory_space<vmem>>, %arg6: memref<512x128xbf16, #tpu.memory_space<vmem>>, %arg7: memref<1x128xf32, #tpu.memory_space<vmem>>, %arg8: memref<8x128xf32, #tpu.memory_space<vmem>>) attributes {dimension_semantics = [], scalar_prefetch = 0 : i64, scratch_operands = 0 : i64, tpu.core_type = #tpu.core_type<tc>} {
    %c0 = arith.constant 0 : index
    %c0_0 = arith.constant 0 : index
    %0 = vector.load %arg0[%c0, %c0_0] : memref<8x1024xf32, #tpu.memory_space<vmem>>, vector<8x256xf32>
    %c0_1 = arith.constant 0 : index
    %1 = memref.load %arg1[%c0_1] : memref<16xf32, #tpu.memory_space<smem>>
    %2 = vector.broadcast %1 : f32 to vector<8x256xf32>
    %3 = arith.mulf %0, %2 : vector<8x256xf32>
    %c0_2 = arith.constant 0 : index
    %c256 = arith.constant 256 : index
    %4 = vector.load %arg0[%c0_2, %c256] : memref<8x1024xf32, #tpu.memory_space<vmem>>, vector<8x256xf32>
    %c1 = arith.constant 1 : index
    %5 = memref.load %arg1[%c1] : memref<16xf32, #tpu.memory_space<smem>>
    %6 = vector.broadcast %5 : f32 to vector<8x256xf32>
    %7 = arith.mulf %4, %6 : vector<8x256xf32>
    %8 = arith.addf %3, %7 : vector<8x256xf32>
    %c0_3 = arith.constant 0 : index
    %c512 = arith.constant 512 : index
    %9 = vector.load %arg0[%c0_3, %c512] : memref<8x1024xf32, #tpu.memory_space<vmem>>, vector<8x256xf32>
    %c2 = arith.constant 2 : index
    %10 = memref.load %arg1[%c2] : memref<16xf32, #tpu.memory_space<smem>>
    %11 = vector.broadcast %10 : f32 to vector<8x256xf32>
    %12 = arith.mulf %9, %11 : vector<8x256xf32>
    %13 = arith.addf %8, %12 : vector<8x256xf32>
    %c0_4 = arith.constant 0 : index
    %c768 = arith.constant 768 : index
    %14 = vector.load %arg0[%c0_4, %c768] : memref<8x1024xf32, #tpu.memory_space<vmem>>, vector<8x256xf32>
    %c3 = arith.constant 3 : index
    %15 = memref.load %arg1[%c3] : memref<16xf32, #tpu.memory_space<smem>>
    %16 = vector.broadcast %15 : f32 to vector<8x256xf32>
    %17 = arith.mulf %14, %16 : vector<8x256xf32>
    %18 = arith.addf %13, %17 : vector<8x256xf32>
    %c0_5 = arith.constant 0 : index
    %19 = memref.load %arg2[%c0_5] : memref<4xf32, #tpu.memory_space<smem>>
    %20 = vector.broadcast %19 : f32 to vector<8x256xf32>
    %21 = arith.addf %18, %20 : vector<8x256xf32>
    %cst = arith.constant 0.000000e+00 : f32
    %22 = vector.broadcast %cst : f32 to vector<8x256xf32>
    %23 = arith.maximumf %21, %22 : vector<8x256xf32>
    %c0_6 = arith.constant 0 : index
    %c0_7 = arith.constant 0 : index
    %24 = vector.load %arg0[%c0_6, %c0_7] : memref<8x1024xf32, #tpu.memory_space<vmem>>, vector<8x256xf32>
    %c4 = arith.constant 4 : index
    %25 = memref.load %arg1[%c4] : memref<16xf32, #tpu.memory_space<smem>>
    %26 = vector.broadcast %25 : f32 to vector<8x256xf32>
    %27 = arith.mulf %24, %26 : vector<8x256xf32>
    %c0_8 = arith.constant 0 : index
    %c256_9 = arith.constant 256 : index
    %28 = vector.load %arg0[%c0_8, %c256_9] : memref<8x1024xf32, #tpu.memory_space<vmem>>, vector<8x256xf32>
    %c5 = arith.constant 5 : index
    %29 = memref.load %arg1[%c5] : memref<16xf32, #tpu.memory_space<smem>>
    %30 = vector.broadcast %29 : f32 to vector<8x256xf32>
    %31 = arith.mulf %28, %30 : vector<8x256xf32>
    %32 = arith.addf %27, %31 : vector<8x256xf32>
    %c0_10 = arith.constant 0 : index
    %c512_11 = arith.constant 512 : index
    %33 = vector.load %arg0[%c0_10, %c512_11] : memref<8x1024xf32, #tpu.memory_space<vmem>>, vector<8x256xf32>
    %c6 = arith.constant 6 : index
    %34 = memref.load %arg1[%c6] : memref<16xf32, #tpu.memory_space<smem>>
    %35 = vector.broadcast %34 : f32 to vector<8x256xf32>
    %36 = arith.mulf %33, %35 : vector<8x256xf32>
    %37 = arith.addf %32, %36 : vector<8x256xf32>
    %c0_12 = arith.constant 0 : index
    %c768_13 = arith.constant 768 : index
    %38 = vector.load %arg0[%c0_12, %c768_13] : memref<8x1024xf32, #tpu.memory_space<vmem>>, vector<8x256xf32>
    %c7 = arith.constant 7 : index
    %39 = memref.load %arg1[%c7] : memref<16xf32, #tpu.memory_space<smem>>
    %40 = vector.broadcast %39 : f32 to vector<8x256xf32>
    %41 = arith.mulf %38, %40 : vector<8x256xf32>
    %42 = arith.addf %37, %41 : vector<8x256xf32>
    %c1_14 = arith.constant 1 : index
    %43 = memref.load %arg2[%c1_14] : memref<4xf32, #tpu.memory_space<smem>>
    %44 = vector.broadcast %43 : f32 to vector<8x256xf32>
    %45 = arith.addf %42, %44 : vector<8x256xf32>
    %cst_15 = arith.constant 0.000000e+00 : f32
    %46 = vector.broadcast %cst_15 : f32 to vector<8x256xf32>
    %47 = arith.maximumf %45, %46 : vector<8x256xf32>
    %c0_16 = arith.constant 0 : index
    %c0_17 = arith.constant 0 : index
    %48 = vector.load %arg0[%c0_16, %c0_17] : memref<8x1024xf32, #tpu.memory_space<vmem>>, vector<8x256xf32>
    %c8 = arith.constant 8 : index
    %49 = memref.load %arg1[%c8] : memref<16xf32, #tpu.memory_space<smem>>
    %50 = vector.broadcast %49 : f32 to vector<8x256xf32>
    %51 = arith.mulf %48, %50 : vector<8x256xf32>
    %c0_18 = arith.constant 0 : index
    %c256_19 = arith.constant 256 : index
    %52 = vector.load %arg0[%c0_18, %c256_19] : memref<8x1024xf32, #tpu.memory_space<vmem>>, vector<8x256xf32>
    %c9 = arith.constant 9 : index
    %53 = memref.load %arg1[%c9] : memref<16xf32, #tpu.memory_space<smem>>
    %54 = vector.broadcast %53 : f32 to vector<8x256xf32>
    %55 = arith.mulf %52, %54 : vector<8x256xf32>
    %56 = arith.addf %51, %55 : vector<8x256xf32>
    %c0_20 = arith.constant 0 : index
    %c512_21 = arith.constant 512 : index
    %57 = vector.load %arg0[%c0_20, %c512_21] : memref<8x1024xf32, #tpu.memory_space<vmem>>, vector<8x256xf32>
    %c10 = arith.constant 10 : index
    %58 = memref.load %arg1[%c10] : memref<16xf32, #tpu.memory_space<smem>>
    %59 = vector.broadcast %58 : f32 to vector<8x256xf32>
    %60 = arith.mulf %57, %59 : vector<8x256xf32>
    %61 = arith.addf %56, %60 : vector<8x256xf32>
    %c0_22 = arith.constant 0 : index
    %c768_23 = arith.constant 768 : index
    %62 = vector.load %arg0[%c0_22, %c768_23] : memref<8x1024xf32, #tpu.memory_space<vmem>>, vector<8x256xf32>
    %c11 = arith.constant 11 : index
    %63 = memref.load %arg1[%c11] : memref<16xf32, #tpu.memory_space<smem>>
    %64 = vector.broadcast %63 : f32 to vector<8x256xf32>
    %65 = arith.mulf %62, %64 : vector<8x256xf32>
    %66 = arith.addf %61, %65 : vector<8x256xf32>
    %c2_24 = arith.constant 2 : index
    %67 = memref.load %arg2[%c2_24] : memref<4xf32, #tpu.memory_space<smem>>
    %68 = vector.broadcast %67 : f32 to vector<8x256xf32>
    %69 = arith.addf %66, %68 : vector<8x256xf32>
    %cst_25 = arith.constant 0.000000e+00 : f32
    %70 = vector.broadcast %cst_25 : f32 to vector<8x256xf32>
    %71 = arith.maximumf %69, %70 : vector<8x256xf32>
    %c0_26 = arith.constant 0 : index
    %c0_27 = arith.constant 0 : index
    %72 = vector.load %arg0[%c0_26, %c0_27] : memref<8x1024xf32, #tpu.memory_space<vmem>>, vector<8x256xf32>
    %c12 = arith.constant 12 : index
    %73 = memref.load %arg1[%c12] : memref<16xf32, #tpu.memory_space<smem>>
    %74 = vector.broadcast %73 : f32 to vector<8x256xf32>
    %75 = arith.mulf %72, %74 : vector<8x256xf32>
    %c0_28 = arith.constant 0 : index
    %c256_29 = arith.constant 256 : index
    %76 = vector.load %arg0[%c0_28, %c256_29] : memref<8x1024xf32, #tpu.memory_space<vmem>>, vector<8x256xf32>
    %c13 = arith.constant 13 : index
    %77 = memref.load %arg1[%c13] : memref<16xf32, #tpu.memory_space<smem>>
    %78 = vector.broadcast %77 : f32 to vector<8x256xf32>
    %79 = arith.mulf %76, %78 : vector<8x256xf32>
    %80 = arith.addf %75, %79 : vector<8x256xf32>
    %c0_30 = arith.constant 0 : index
    %c512_31 = arith.constant 512 : index
    %81 = vector.load %arg0[%c0_30, %c512_31] : memref<8x1024xf32, #tpu.memory_space<vmem>>, vector<8x256xf32>
    %c14 = arith.constant 14 : index
    %82 = memref.load %arg1[%c14] : memref<16xf32, #tpu.memory_space<smem>>
    %83 = vector.broadcast %82 : f32 to vector<8x256xf32>
    %84 = arith.mulf %81, %83 : vector<8x256xf32>
    %85 = arith.addf %80, %84 : vector<8x256xf32>
    %c0_32 = arith.constant 0 : index
    %c768_33 = arith.constant 768 : index
    %86 = vector.load %arg0[%c0_32, %c768_33] : memref<8x1024xf32, #tpu.memory_space<vmem>>, vector<8x256xf32>
    %c15 = arith.constant 15 : index
    %87 = memref.load %arg1[%c15] : memref<16xf32, #tpu.memory_space<smem>>
    %88 = vector.broadcast %87 : f32 to vector<8x256xf32>
    %89 = arith.mulf %86, %88 : vector<8x256xf32>
    %90 = arith.addf %85, %89 : vector<8x256xf32>
    %c3_34 = arith.constant 3 : index
    %91 = memref.load %arg2[%c3_34] : memref<4xf32, #tpu.memory_space<smem>>
    %92 = vector.broadcast %91 : f32 to vector<8x256xf32>
    %93 = arith.addf %90, %92 : vector<8x256xf32>
    %cst_35 = arith.constant 0.000000e+00 : f32
    %94 = vector.broadcast %cst_35 : f32 to vector<8x256xf32>
    %95 = arith.maximumf %93, %94 : vector<8x256xf32>
    %96 = tpu.concatenate %23, %47, %71, %95 in 1 : vector<8x256xf32>, vector<8x256xf32>, vector<8x256xf32>, vector<8x256xf32> -> vector<8x1024xf32>
    %97 = arith.truncf %96 : vector<8x1024xf32> to vector<8x1024xbf16>
    %c0_36 = arith.constant 0 : index
    %c0_37 = arith.constant 0 : index
    %98 = vector.load %arg3[%c0_36, %c0_37] : memref<1024x512xbf16, #tpu.memory_space<vmem>>, vector<1024x512xbf16>
    %cst_38 = arith.constant dense<0.000000e+00> : vector<8x512xf32>
    %99 = tpu.matmul %97, %98, %cst_38 {dimension_numbers = #tpu.dot_dimension_numbers<[1], [0], [0], [1], [0, 0, 1, 1], [], []>} : vector<8x1024xbf16>, vector<1024x512xbf16>, vector<8x512xf32> -> vector<8x512xf32>
    %cst_39 = arith.constant dense<0.000000e+00> : vector<512xf32>
    %100 = vector.multi_reduction <add>, %99, %cst_39 [0] : vector<8x512xf32> to vector<512xf32>
    %101 = vector.shape_cast %100 : vector<512xf32> to vector<1x512xf32>
    %cst_40 = arith.constant 8.000000e+00 : f32
    %102 = vector.broadcast %cst_40 : f32 to vector<1x512xf32>
    %103 = arith.divf %101, %102 : vector<1x512xf32>
    %104 = vector.broadcast %103 : vector<1x512xf32> to vector<8x512xf32>
    %105 = arith.subf %99, %104 : vector<8x512xf32>
    %106 = arith.mulf %105, %105 : vector<8x512xf32>
    %cst_41 = arith.constant dense<0.000000e+00> : vector<512xf32>
    %107 = vector.multi_reduction <add>, %106, %cst_41 [0] : vector<8x512xf32> to vector<512xf32>
    %108 = vector.shape_cast %107 : vector<512xf32> to vector<1x512xf32>
    %cst_42 = arith.constant 8.000000e+00 : f32
    %109 = vector.broadcast %cst_42 : f32 to vector<1x512xf32>
    %110 = arith.divf %108, %109 : vector<1x512xf32>
    %cst_43 = arith.constant 9.99999974E-6 : f32
    %111 = vector.broadcast %cst_43 : f32 to vector<1x512xf32>
    %112 = arith.addf %110, %111 : vector<1x512xf32>
    %113 = math.rsqrt %112 : vector<1x512xf32>
    %114 = vector.broadcast %113 : vector<1x512xf32> to vector<8x512xf32>
    %115 = arith.mulf %105, %114 : vector<8x512xf32>
    %c0_44 = arith.constant 0 : index
    %c0_45 = arith.constant 0 : index
    %116 = vector.load %arg4[%c0_44, %c0_45] : memref<1x512xf32, #tpu.memory_space<vmem>>, vector<1x512xf32>
    %117 = vector.broadcast %116 : vector<1x512xf32> to vector<8x512xf32>
    %118 = arith.mulf %115, %117 : vector<8x512xf32>
    %c0_46 = arith.constant 0 : index
    %c0_47 = arith.constant 0 : index
    %119 = vector.load %arg5[%c0_46, %c0_47] : memref<1x512xf32, #tpu.memory_space<vmem>>, vector<1x512xf32>
    %120 = vector.broadcast %119 : vector<1x512xf32> to vector<8x512xf32>
    %121 = arith.addf %118, %120 : vector<8x512xf32>
    %cst_48 = arith.constant 0.000000e+00 : f32
    %122 = vector.broadcast %cst_48 : f32 to vector<8x512xf32>
    %123 = arith.maximumf %121, %122 : vector<8x512xf32>
    %124 = arith.truncf %123 : vector<8x512xf32> to vector<8x512xbf16>
    %c0_49 = arith.constant 0 : index
    %c0_50 = arith.constant 0 : index
    %125 = vector.load %arg6[%c0_49, %c0_50] : memref<512x128xbf16, #tpu.memory_space<vmem>>, vector<512x128xbf16>
    %cst_51 = arith.constant dense<0.000000e+00> : vector<8x128xf32>
    %126 = tpu.matmul %124, %125, %cst_51 {dimension_numbers = #tpu.dot_dimension_numbers<[1], [0], [0], [1], [0, 0, 1, 1], [], []>} : vector<8x512xbf16>, vector<512x128xbf16>, vector<8x128xf32> -> vector<8x128xf32>
    %c0_52 = arith.constant 0 : index
    %c0_53 = arith.constant 0 : index
    %127 = vector.load %arg7[%c0_52, %c0_53] : memref<1x128xf32, #tpu.memory_space<vmem>>, vector<1x128xf32>
    %128 = vector.broadcast %127 : vector<1x128xf32> to vector<8x128xf32>
    %129 = arith.addf %126, %128 : vector<8x128xf32>
    %c0_54 = arith.constant 0 : index
    %c0_55 = arith.constant 0 : index
    %130 = vector.load %arg8[%c0_54, %c0_55] : memref<8x128xf32, #tpu.memory_space<vmem>>, vector<8x128xf32>
    tpu.vector_store %arg8[%c0_54, %c0_55], %129 {strides = array<i32>} : memref<8x128xf32, #tpu.memory_space<vmem>>, vector<8x128xf32>,
    return
  }
}

</mosaic_0001>

<bundles_post_ra>
// kernel: tpu_custom_call.1
= control target key start
LH: loop header
LB: loop body
LE: loop exit
PB: predicated region body
PF: predicated region fallthrough
CT: control target
= control target key end

     0   :  { %13 = vsyncpa [#allocation3], 0  ;;  %s4857_s0 = inlined_call_operand.hbm [shape: f32[8,1024], index: 0, kind: input, shape index: {}]   ;;  %s4858_s1 = inlined_call_operand.hbm [shape: f32[16], index: 1, kind: input, shape index: {}]   ;;  %s4859_s2 = inlined_call_operand.hbm [shape: f32[4], index: 2, kind: input, shape index: {}]   ;;  %s4860_s3 = inlined_call_operand.hbm [shape: bf16[1024,512], index: 3, kind: input, shape index: {}]   ;;  %s4861_s4 = inlined_call_operand.hbm [shape: f32[1,512], index: 4, kind: input, shape index: {}]   ;;  %s4862_s5 = inlined_call_operand.vmem [shape: f32[1,512], index: 5, kind: input, shape index: {}]   ;;  %s4863_s6 = inlined_call_operand.hbm [shape: bf16[512,128], index: 6, kind: input, shape index: {}]   ;;  %s4864_s7 = inlined_call_operand.vmem [shape: f32[1,128], index: 7, kind: input, shape index: {}]   ;;  %s4865_s8 = inlined_call_operand.hbm [shape: f32[8,128], index: 8, kind: output, shape index: {}]  }
   0x1   :  { %14 = vsyncpa [#allocation5], 0 }
   0x2   :  { %15 = vsyncpa [#allocation8], 0 }
   0x3   :  { %16 = vsyncpa [#allocation10], 0 }
   0x4   :  { %17 = vsyncpa [#allocation13], 0  ;;  %s52_s29 = sshll.u32 %s4860_s3, 4  ;;  %s53_s29 = int_to_ptr.hbm [resolvable:$true] %s52_s29 }
   0x5   :  { %18 = vsyncpa [#allocation4], 0  ;;  %s4320_s30 = smov [#allocation9]   ;;  %s24_s12 = sshll.u32 %s4857_s0, 4  ;;  %s25_s12 = int_to_ptr.hbm [resolvable:$true] %s24_s12 }
   0x6   :  { %s54_s9 = sshll.u32 %s4320_s30, 4  ;;  %s4321_s13 = smov 256   ;;  %s55_s9 = int_to_ptr.vmem [resolvable:$true] %s54_s9 }
   0x7   :  { %s4322_s14 = smov 16   ;;  %s4323_s15 = smov [#allocation2]  }
   0x8   :  { %60 = dma.hbm_to_vmem [thread:$0]  %s53_s29, 32768, %s55_s9, [#allocation10], %s4321_s13, %s4321_s13, %s4322_s14  }
   0x9   :  { %s26_s16 = sshll.u32 %s4323_s15, 4  ;;  %s35_s19 = sshll.u32 %s4858_s1, 4  ;;  %s27_s16 = int_to_ptr.vmem [resolvable:$true] %s26_s16  ;;  %s36_s19 = int_to_ptr.hbm [resolvable:$true] %s35_s19 }
   0xa   :  { %29 = dma.hbm_to_vmem [thread:$0]  %s25_s12, 1024, %s27_s16, [#allocation3]  }
   0xb   :  { %s44_s21 = sshll.u32 %s4859_s2, 4  ;;  %s4324_s22 = smov [#allocation6]   ;;  %s45_s21 = int_to_ptr.hbm [resolvable:$true] %s44_s21 }
   0xc   :  { %38 = dma.hbm_to_smem %s36_s19, 16, %s4324_s22, [#allocation5]  }
   0xd   :  { %s4325_s0 = smov [#allocation7]   ;;  %s66_s25 = sshll.u32 %s4861_s4, 4  ;;  %s67_s25 = int_to_ptr.hbm [resolvable:$true] %s66_s25 }
   0xe   :  { %47 = dma.hbm_to_smem %s45_s21, 16, %s4325_s0, [#allocation8]  }
   0xf   :  { %s4326_s26 = smov [#allocation11]   ;;  %s78_s29 = sshll.u32 %s4863_s6, 4  ;;  %s79_s29 = int_to_ptr.hbm [resolvable:$true] %s78_s29 }
  0x10   :  { %s68_s27 = sshll.u32 %s4326_s26, 4  ;;  %s4327_s2 = smov [#allocation12]   ;;  %s69_s27 = int_to_ptr.vmem [resolvable:$true] %s68_s27 }
  0x11   :  { %71 = dma.hbm_to_vmem [thread:$0]  %s67_s25, 64, %s69_s27, [#allocation10]  }
  0x12   :  { %s80_s30 = sshll.u32 %s4327_s2, 4  ;;  %s4328_s9 = smov 64   ;;  %s81_s30 = int_to_ptr.vmem [resolvable:$true] %s80_s30 }
  0x13   :  { %s4329_s10 = smov 4  }
  0x14   :  { %86 = dma.hbm_to_vmem [thread:$0]  %s79_s29, 4096, %s81_s30, [#allocation13], %s4328_s9, %s4328_s9, %s4329_s10  }
  0x15   :  { %4308 = dma.done.wait [#allocation3], 1024  }
  0x16   :  { %4309 = vsyncadd [#allocation3], 4294966272 }
  0x17   :  { %4310 = dma.done.wait [#allocation5], 16  }
  0x18   :  { %4311 = vsyncadd [#allocation5], 4294967280 }
  0x19   :  { %4312 = dma.done.wait [#allocation8], 16  }
  0x1a   :  { %4313 = vsyncadd [#allocation8], 4294967280 }
  0x1b   :  { %4314 = dma.done.wait [#allocation10], 32832  }
  0x1c   :  { %4315 = vsyncadd [#allocation10], 4294934464 }
  0x1d   :  { %4316 = dma.done.wait [#allocation13], 4096  }
  0x1e   :  { %4317 = vsyncadd [#allocation13], 4294963200 }
  0x1f   :  { %113 = sfence }
  0x20   :  { %v2815_v0 = vld [vmem:[#allocation9 + $0xe0] sm:$0xf]  ;;  %v3883_v1 = vld [vmem:[#allocation9 + $0xec] sm:$0xf0]  ;;  %s4423_s4 = sld [smem:[#allocation6 + $0x4]]  ;;  %s4331_s29 = smov [#allocation14]  }
  0x21   :  { %v2943_v2 = vld [vmem:[#allocation9 + $0x1e0] sm:$0xf]  ;;  %v2816_v3 = vor.u32 %v3883_v1, %v2815_v0  ;;  %v3915_v4 = vld [vmem:[#allocation9 + $0x1ec] sm:$0xf0]  ;;  %s4433_s6 = sld [smem:[#allocation6 + $0x5]]  ;;  %s2667_s2 = sshll.u32 %s4331_s29, 4  ;;  %s2668_s2 = int_to_ptr.vmem [resolvable:$true] %s2667_s2 }
  0x22   :  { %v3071_v5 = vld [vmem:[#allocation9 + $0x2e0] sm:$0xf]  ;;  %v3947_v6 = vld [vmem:[#allocation9 + $0x2ec] sm:$0xf0]  ;;  %v2944_v7 = vor.u32 %v3915_v4, %v2943_v2  ;;  %s4439_s11 = sld [smem:[#allocation6 + $0x6]]  ;;  %s2669_s10 = sshll.u32 %s4865_s8, 4  ;;  %s2670_s10 = int_to_ptr.hbm [resolvable:$true] %s2669_s10 }
  0x23   :  { %v3072_v8 = vor.u32 %v3947_v6, %v3071_v5  ;;  %v3199_v9 = vld [vmem:[#allocation9 + $0x3e0] sm:$0xf]  ;;  %v3979_v10 = vld [vmem:[#allocation9 + $0x3ec] sm:$0xf0]  ;;  %1778 = vmatpush.bf16.msra.mxu0 %v2816_v3  ;;  %s4447_s12 = sld [smem:[#allocation6 + $0x7]] }
  0x24   :  { %v2799_v11 = vld [vmem:[#allocation9 + $0xc0] sm:$0xf]  ;;  %v3200_v12 = vor.u32 %v3979_v10, %v3199_v9  ;;  %v3879_v13 = vld [vmem:[#allocation9 + $0xcc] sm:$0xf0]  ;;  %1791 = vmatpush.bf16.msra.mxu1 %v2944_v7  ;;  %s4457_s13 = sld [smem:[#allocation7 + $0x1]] }
  0x25   :  { %v2927_v14 = vld [vmem:[#allocation9 + $0x1c0] sm:$0xf]  ;;  %v3911_v15 = vld [vmem:[#allocation9 + $0x1cc] sm:$0xf0]  ;;  %1804 = vmatpush.bf16.msra.mxu2 %v3072_v8  ;;  %v2800_v16 = vor.u32 %v3879_v13, %v2799_v11  ;;  %s4475_s14 = sld [smem:[#allocation6]] }
  0x26   :  { %v2928_v17 = vor.u32 %v3911_v15, %v2927_v14  ;;  %v3055_v18 = vld [vmem:[#allocation9 + $0x2c0] sm:$0xf]  ;;  %v3943_v19 = vld [vmem:[#allocation9 + $0x2cc] sm:$0xf0]  ;;  %1817 = vmatpush.bf16.msra.mxu3 %v3200_v12  ;;  %s4490_s15 = sld [smem:[#allocation6 + $0x1]] }
  0x27   :  { %v3183_v20 = vld [vmem:[#allocation9 + $0x3c0] sm:$0xf]  ;;  %v3056_v21 = vor.u32 %v3943_v19, %v3055_v18  ;;  %v3975_v22 = vld [vmem:[#allocation9 + $0x3cc] sm:$0xf0]  ;;  %1779 = vmatpush.bf16.msra.mxu0 %v2800_v16  ;;  %s4500_s16 = sld [smem:[#allocation6 + $0x2]] }
  0x28   :  { %v2783_v23 = vld [vmem:[#allocation9 + $0xa0] sm:$0xf]  ;;  %v3875_v24 = vld [vmem:[#allocation9 + $0xac] sm:$0xf0]  ;;  %v3184_v25 = vor.u32 %v3975_v22, %v3183_v20  ;;  %1792 = vmatpush.bf16.msra.mxu1 %v2928_v17  ;;  %s4509_s17 = sld [smem:[#allocation6 + $0x3]] }
  0x29   :  { %v2911_v26 = vld [vmem:[#allocation9 + $0x1a0] sm:$0xf]  ;;  %v3907_v27 = vld [vmem:[#allocation9 + $0x1ac] sm:$0xf0]  ;;  %v2784_v29 = vor.u32 %v3875_v24, %v2783_v23  ;;  %1805 = vmatpush.bf16.msra.mxu2 %v3056_v21  ;;  %s4520_s18 = sld [smem:[#allocation7]] }
  0x2a   :  { %v3039_v28 = vld [vmem:[#allocation9 + $0x2a0] sm:$0xf]  ;;  %v3939_v30 = vld [vmem:[#allocation9 + $0x2ac] sm:$0xf0]  ;;  %v2912_v33 = vor.u32 %v3907_v27, %v2911_v26  ;;  %1818 = vmatpush.bf16.msra.mxu3 %v3184_v25  ;;  %s4621_s19 = sld [smem:[#allocation6 + $0xc]] }
  0x2b   :  { %v3167_v31 = vld [vmem:[#allocation9 + $0x3a0] sm:$0xf]  ;;  %v3971_v32 = vld [vmem:[#allocation9 + $0x3ac] sm:$0xf0]  ;;  %v3040_v34 = vor.u32 %v3939_v30, %v3039_v28  ;;  %1780 = vmatpush.bf16.msra.mxu0 %v2784_v29  ;;  %s4632_s3 = sld [smem:[#allocation6 + $0xd]] }
  0x2c   :  { %v2767_v35 = vld [vmem:[#allocation9 + $0x80] sm:$0xf]  ;;  %v3871_v36 = vld [vmem:[#allocation9 + $0x8c] sm:$0xf0]  ;;  %v3168_v38 = vor.u32 %v3971_v32, %v3167_v31  ;;  %1793 = vmatpush.bf16.msra.mxu1 %v2912_v33  ;;  %s4644_s20 = sld [smem:[#allocation6 + $0xe]] }
  0x2d   :  { %v2895_v37 = vld [vmem:[#allocation9 + $0x180] sm:$0xf]  ;;  %v3903_v39 = vld [vmem:[#allocation9 + $0x18c] sm:$0xf0]  ;;  %v2768_v44 = vor.u32 %v3871_v36, %v2767_v35  ;;  %1806 = vmatpush.bf16.msra.mxu2 %v3040_v34  ;;  %s4659_s21 = sld [smem:[#allocation6 + $0xf]] }
  0x2e   :  { %v3023_v40 = vld [vmem:[#allocation9 + $0x280] sm:$0xf]  ;;  %v3935_v41 = vld [vmem:[#allocation9 + $0x28c] sm:$0xf0]  ;;  %v2896_v45 = vor.u32 %v3903_v39, %v2895_v37  ;;  %1819 = vmatpush.bf16.msra.mxu3 %v3168_v38  ;;  %s4671_s22 = sld [smem:[#allocation7 + $0x3]] }
  0x2f   :  { %v3151_v42 = vld [vmem:[#allocation9 + $0x380] sm:$0xf]  ;;  %v3967_v43 = vld [vmem:[#allocation9 + $0x38c] sm:$0xf0]  ;;  %v3024_v46 = vor.u32 %v3935_v41, %v3023_v40  ;;  %1781 = vmatpush.bf16.msra.mxu0 %v2768_v44  ;;  %s4680_s0 = sld [smem:[#allocation6 + $0x8]] }
  0x30   :  { %v2751_v47 = vld [vmem:[#allocation9 + $0x60] sm:$0xf]  ;;  %v3867_v48 = vld [vmem:[#allocation9 + $0x6c] sm:$0xf0]  ;;  %v3152_v50 = vor.u32 %v3967_v43, %v3151_v42  ;;  %1794 = vmatpush.bf16.msra.mxu1 %v2896_v45  ;;  %s4687_s23 = sld [smem:[#allocation6 + $0x9]] }
  0x31   :  { %v2879_v49 = vld [vmem:[#allocation9 + $0x160] sm:$0xf]  ;;  %v3899_v51 = vld [vmem:[#allocation9 + $0x16c] sm:$0xf0]  ;;  %v2752_v56 = vor.u32 %v3867_v48, %v2751_v47  ;;  %1807 = vmatpush.bf16.msra.mxu2 %v3024_v46  ;;  %s4699_s24 = sld [smem:[#allocation6 + $0xa]] }
  0x32   :  { %v3007_v52 = vld [vmem:[#allocation9 + $0x260] sm:$0xf]  ;;  %v3931_v53 = vld [vmem:[#allocation9 + $0x26c] sm:$0xf0]  ;;  %v2880_v57 = vor.u32 %v3899_v51, %v2879_v49  ;;  %1820 = vmatpush.bf16.msra.mxu3 %v3152_v50  ;;  %s4706_s25 = sld [smem:[#allocation6 + $0xb]] }
  0x33   :  { %v3135_v54 = vld [vmem:[#allocation9 + $0x360] sm:$0xf]  ;;  %v3963_v55 = vld [vmem:[#allocation9 + $0x36c] sm:$0xf0]  ;;  %v3008_v58 = vor.u32 %v3931_v53, %v3007_v52  ;;  %1782 = vmatpush.bf16.msra.mxu0 %v2752_v56  ;;  %s4721_s26 = sld [smem:[#allocation7 + $0x2]] }
  0x34   :  { %v2735_v59 = vld [vmem:[#allocation9 + $0x40] sm:$0xf]  ;;  %v3863_v60 = vld [vmem:[#allocation9 + $0x4c] sm:$0xf0]  ;;  %v3136_v62 = vor.u32 %v3963_v55, %v3135_v54  ;;  %1795 = vmatpush.bf16.msra.mxu1 %v2880_v57 }
  0x35   :  { %v2863_v61 = vld [vmem:[#allocation9 + $0x140] sm:$0xf]  ;;  %v3895_v63 = vld [vmem:[#allocation9 + $0x14c] sm:$0xf0]  ;;  %v2736_v4 = vor.u32 %v3863_v60, %v2735_v59  ;;  %1808 = vmatpush.bf16.msra.mxu2 %v3008_v58 }
  0x36   :  { %v2991_v0 = vld [vmem:[#allocation9 + $0x240] sm:$0xf]  ;;  %v3927_v1 = vld [vmem:[#allocation9 + $0x24c] sm:$0xf0]  ;;  %v2864_v5 = vor.u32 %v3895_v63, %v2863_v61  ;;  %1821 = vmatpush.bf16.msra.mxu3 %v3136_v62 }
  0x37   :  { %v3119_v2 = vld [vmem:[#allocation9 + $0x340] sm:$0xf]  ;;  %v3959_v3 = vld [vmem:[#allocation9 + $0x34c] sm:$0xf0]  ;;  %v2992_v6 = vor.u32 %v3927_v1, %v2991_v0  ;;  %1783 = vmatpush.bf16.msra.mxu0 %v2736_v4 }
  0x38   :  { %v2719_v7 = vld [vmem:[#allocation9 + $0x20] sm:$0xf]  ;;  %v3859_v8 = vld [vmem:[#allocation9 + $0x2c] sm:$0xf0]  ;;  %v3120_v10 = vor.u32 %v3959_v3, %v3119_v2  ;;  %1796 = vmatpush.bf16.msra.mxu1 %v2864_v5 }
  0x39   :  { %v2847_v9 = vld [vmem:[#allocation9 + $0x120] sm:$0xf]  ;;  %v3891_v11 = vld [vmem:[#allocation9 + $0x12c] sm:$0xf0]  ;;  %v2720_v16 = vor.u32 %v3859_v8, %v2719_v7  ;;  %1809 = vmatpush.bf16.msra.mxu2 %v2992_v6 }
  0x3a   :  { %v2975_v12 = vld [vmem:[#allocation9 + $0x220] sm:$0xf]  ;;  %v3923_v13 = vld [vmem:[#allocation9 + $0x22c] sm:$0xf0]  ;;  %v2848_v20 = vor.u32 %v3891_v11, %v2847_v9  ;;  %1822 = vmatpush.bf16.msra.mxu3 %v3120_v10  ;;  %v4443_v10 = vld [vmem:[#allocation2 + $0x8] sm:$0xff] }
  0x3b   :  { %v3103_v14 = vld [vmem:[#allocation9 + $0x320] sm:$0xf]  ;;  %v3955_v15 = vld [vmem:[#allocation9 + $0x32c] sm:$0xf0]  ;;  %v2976_v21 = vor.u32 %v3923_v13, %v2975_v12  ;;  %1784 = vmatpush.bf16.msra.mxu0 %v2720_v16 }
  0x3c   :  { %v2703_v17 = vld [vmem:[#allocation9] sm:$0xf]  ;;  %v3855_v18 = vld [vmem:[#allocation9 + $0xc] sm:$0xf0]  ;;  %v3104_v25 = vor.u32 %v3955_v15, %v3103_v14  ;;  %1797 = vmatpush.bf16.msra.mxu1 %v2848_v20 }
  0x3d   :  { %v2831_v19 = vld [vmem:[#allocation9 + $0x100] sm:$0xf]  ;;  %v3887_v22 = vld [vmem:[#allocation9 + $0x10c] sm:$0xf0]  ;;  %v2704_v32 = vor.u32 %v3855_v18, %v2703_v17  ;;  %1810 = vmatpush.bf16.msra.mxu2 %v2976_v21 }
  0x3e   :  { %v2959_v23 = vld [vmem:[#allocation9 + $0x200] sm:$0xf]  ;;  %v3919_v24 = vld [vmem:[#allocation9 + $0x20c] sm:$0xf0]  ;;  %v2832_v36 = vor.u32 %v3887_v22, %v2831_v19  ;;  %1823 = vmatpush.bf16.msra.mxu3 %v3104_v25 }
  0x3f   :  { %v3087_v26 = vld [vmem:[#allocation9 + $0x300] sm:$0xf]  ;;  %v3951_v27 = vld [vmem:[#allocation9 + $0x30c] sm:$0xf0]  ;;  %v2960_v37 = vor.u32 %v3919_v24, %v2959_v23  ;;  %1785 = vmatpush.bf16.msra.mxu0 %v2704_v32  ;;  %v4477_v24 = vld [vmem:[#allocation2 + $0x18] sm:$0xff] }
  0x40   :  { %v3327_v28 = vld [vmem:[#allocation9 + $0x4e0] sm:$0xf]  ;;  %v4011_v29 = vld [vmem:[#allocation9 + $0x4ec] sm:$0xf0]  ;;  %v3088_v41 = vor.u32 %v3951_v27, %v3087_v26  ;;  %1798 = vmatpush.bf16.msra.mxu1 %v2832_v36  ;;  %v4502_v36 = vld [vmem:[#allocation2 + $0x38] sm:$0xff] }
  0x41   :  { %v3455_v30 = vld [vmem:[#allocation9 + $0x5e0] sm:$0xf]  ;;  %v4043_v31 = vld [vmem:[#allocation9 + $0x5ec] sm:$0xf0]  ;;  %v3328_v42 = vor.u32 %v4011_v29, %v3327_v28  ;;  %1811 = vmatpush.bf16.msra.mxu2 %v2960_v37  ;;  %v151_v28 = vstv %s4423_s4 }
  0x42   :  { %v3583_v33 = vld [vmem:[#allocation9 + $0x6e0] sm:$0xf]  ;;  %v4075_v34 = vld [vmem:[#allocation9 + $0x6ec] sm:$0xf0]  ;;  %v3456_v46 = vor.u32 %v4043_v31, %v3455_v30  ;;  %1824 = vmatpush.bf16.msra.mxu3 %v3088_v41  ;;  %v4492_v31 = vld [vmem:[#allocation2 + $0x28] sm:$0xff]  ;;  %v153_v37 = vmul.f32 %v151_v28, %v4443_v10 }
  0x43   :  { %v3711_v35 = vld [vmem:[#allocation9 + $0x7e0] sm:$0xf]  ;;  %v4107_v38 = vld [vmem:[#allocation9 + $0x7ec] sm:$0xf0]  ;;  %v3584_v47 = vor.u32 %v4075_v34, %v3583_v33  ;;  %1830 = vmatpush.bf16.msrb.mxu0 %v3328_v42  ;;  %v155_v34 = vstv %s4433_s6 }
  0x44   :  { %v3311_v39 = vld [vmem:[#allocation9 + $0x4c0] sm:$0xf]  ;;  %v4007_v40 = vld [vmem:[#allocation9 + $0x4cc] sm:$0xf0]  ;;  %v3712_v51 = vor.u32 %v4107_v38, %v3711_v35  ;;  %1843 = vmatpush.bf16.msrb.mxu1 %v3456_v46  ;;  %v157_v41 = vmul.f32 %v155_v34, %v4477_v24 }
  0x45   :  { %v3439_v43 = vld [vmem:[#allocation9 + $0x5c0] sm:$0xf]  ;;  %v4039_v44 = vld [vmem:[#allocation9 + $0x5cc] sm:$0xf0]  ;;  %v3312_v0 = vor.u32 %v4007_v40, %v3311_v39  ;;  %1856 = vmatpush.bf16.msrb.mxu2 %v3584_v47  ;;  %v161_v39 = vstv %s4439_s11 }
  0x46   :  { %v3567_v45 = vld [vmem:[#allocation9 + $0x6c0] sm:$0xf]  ;;  %v4071_v48 = vld [vmem:[#allocation9 + $0x6cc] sm:$0xf0]  ;;  %v3440_v6 = vor.u32 %v4039_v44, %v3439_v43  ;;  %1869 = vmatpush.bf16.msrb.mxu3 %v3712_v51  ;;  %v163_v47 = vmul.f32 %v161_v39, %v4492_v31  ;;  %v173_v51 = vstv %s4457_s13 }
  0x47   :  { %v4395_v49 = vld [vmem:[#allocation9 + $0x7c0] sm:$0xf]  ;;  %v4397_v50 = vld [vmem:[#allocation9 + $0x7cc] sm:$0xf0]  ;;  %v3568_v7 = vor.u32 %v4071_v48, %v3567_v45  ;;  %1831 = vmatpush.bf16.msrb.mxu0 %v3312_v0  ;;  %v167_v45 = vstv %s4447_s12 }
  0x48   :  { %v4399_v52 = vld [vmem:[#allocation9 + $0x4a0] sm:$0xf]  ;;  %v4401_v53 = vld [vmem:[#allocation9 + $0x4ac] sm:$0xf0]  ;;  %v3696_v11 = vor.u32 %v4397_v50, %v4395_v49  ;;  %1844 = vmatpush.bf16.msrb.mxu1 %v3440_v6  ;;  %v159_v50 = vadd.f32 %v157_v41, %v153_v37 }
  0x49   :  { %v4403_v54 = vld [vmem:[#allocation9 + $0x5a0] sm:$0xf]  ;;  %v4405_v55 = vld [vmem:[#allocation9 + $0x5ac] sm:$0xf0]  ;;  %v3296_v14 = vor.u32 %v4401_v53, %v4399_v52  ;;  %1857 = vmatpush.bf16.msrb.mxu2 %v3568_v7  ;;  %v117_v52 = vstv %s4475_s14  ;;  %v169_v53 = vmul.f32 %v167_v45, %v4502_v36 }
  0x4a   :  { %v4407_v56 = vld [vmem:[#allocation9 + $0x6a0] sm:$0xf]  ;;  %v4409_v57 = vld [vmem:[#allocation9 + $0x6ac] sm:$0xf0]  ;;  %v3424_v15 = vor.u32 %v4405_v55, %v4403_v54  ;;  %1870 = vmatpush.bf16.msrb.mxu3 %v3696_v11 }
  0x4b   :  { %v4411_v58 = vld [vmem:[#allocation9 + $0x7a0] sm:$0xf]  ;;  %v4413_v59 = vld [vmem:[#allocation9 + $0x7ac] sm:$0xf0]  ;;  %v3552_v18 = vor.u32 %v4409_v57, %v4407_v56  ;;  %1832 = vmatpush.bf16.msrb.mxu0 %v3296_v14 }
  0x4c   :  { %v4415_v60 = vld [vmem:[#allocation9 + $0x480] sm:$0xf]  ;;  %v4417_v61 = vld [vmem:[#allocation9 + $0x48c] sm:$0xf0]  ;;  %v3680_v19 = vor.u32 %v4413_v59, %v4411_v58  ;;  %1845 = vmatpush.bf16.msrb.mxu1 %v3424_v15  ;;  %v123_v59 = vstv %s4490_s15 }
  0x4d   :  { %v4419_v62 = vld [vmem:[#allocation9 + $0x580] sm:$0xf]  ;;  %v4421_v63 = vld [vmem:[#allocation9 + $0x58c] sm:$0xf0]  ;;  %v3280_v20 = vor.u32 %v4417_v61, %v4415_v60  ;;  %1858 = vmatpush.bf16.msrb.mxu2 %v3552_v18  ;;  %v165_v60 = vadd.f32 %v163_v47, %v159_v50  ;;  %v125_v6 = vmul.f32 %v123_v59, %v4477_v24 }
  0x4e   :  { %v4425_v1 = vld [vmem:[#allocation9 + $0x680] sm:$0xf]  ;;  %v4427_v2 = vld [vmem:[#allocation9 + $0x68c] sm:$0xf0]  ;;  %v3408_v21 = vor.u32 %v4421_v63, %v4419_v62  ;;  %1871 = vmatpush.bf16.msrb.mxu3 %v3680_v19  ;;  %v139_v19 = vstv %s4509_s17 }
  0x4f   :  { %v4429_v3 = vld [vmem:[#allocation9 + $0x780] sm:$0xf]  ;;  %v4431_v4 = vld [vmem:[#allocation9 + $0x78c] sm:$0xf0]  ;;  %v3536_v25 = vor.u32 %v4427_v2, %v4425_v1  ;;  %1833 = vmatpush.bf16.msrb.mxu0 %v3280_v20  ;;  %v131_v1 = vstv %s4500_s16  ;;  %v119_v2 = vmul.f32 %v117_v52, %v4443_v10  ;;  %v171_v20 = vadd.f32 %v169_v53, %v165_v60 }
  0x50   :  { %v4435_v5 = vld [vmem:[#allocation9 + $0x460] sm:$0xf]  ;;  %v4441_v9 = vld [vmem:[#allocation9 + $0x46c] sm:$0xf0]  ;;  %v3664_v26 = vor.u32 %v4431_v4, %v4429_v3  ;;  %1846 = vmatpush.bf16.msrb.mxu1 %v3408_v21  ;;  %v133_v50 = vmul.f32 %v131_v1, %v4492_v31  ;;  %v141_v3 = vmul.f32 %v139_v19, %v4502_v36 }
  0x51   :  { %v4437_v8 = vld [vmem:[#allocation2] sm:$0xff]  ;;  %v4451_v13 = vld [vmem:[#allocation9 + $0x56c] sm:$0xf0]  ;;  %v3264_v29 = vor.u32 %v4441_v9, %v4435_v5  ;;  %1859 = vmatpush.bf16.msrb.mxu2 %v3536_v25 }
  0x52   :  { %v4449_v12 = vld [vmem:[#allocation9 + $0x560] sm:$0xf]  ;;  %v4461_v17 = vld [vmem:[#allocation9 + $0x66c] sm:$0xf0]  ;;  %v152_v33 = vmul.f32 %v151_v28, %v4437_v8  ;;  %v118_v58 = vmul.f32 %v117_v52, %v4437_v8  ;;  %1872 = vmatpush.bf16.msrb.mxu3 %v3664_v26 }
  0x53   :  { %v4459_v16 = vld [vmem:[#allocation9 + $0x660] sm:$0xf]  ;;  %v4471_v22 = vld [vmem:[#allocation2 + $0x10] sm:$0xff]  ;;  %v3392_v35 = vor.u32 %v4451_v13, %v4449_v12  ;;  %1834 = vmatpush.bf16.msrb.mxu0 %v3264_v29 }
  0x54   :  { %v4473_v23 = vld [vmem:[#allocation9 + $0x760] sm:$0xf]  ;;  %v4488_v30 = vld [vmem:[#allocation9 + $0x76c] sm:$0xf0]  ;;  %v156_v38 = vmul.f32 %v155_v34, %v4471_v22  ;;  %v3520_v40 = vor.u32 %v4461_v17, %v4459_v16  ;;  %v124_v0 = vmul.f32 %v123_v59, %v4471_v22  ;;  %v145_v59 = vstv %s4520_s18 }
  0x55   :  { %v4483_v27 = vld [vmem:[#allocation2 + $0x20] sm:$0xff]  ;;  %v4494_v32 = vld [vmem:[#allocation2 + $0x30] sm:$0xff]  ;;  %v3648_v46 = vor.u32 %v4488_v30, %v4473_v23  ;;  %1847 = vmatpush.bf16.msrb.mxu1 %v3392_v35 }
  0x56   :  { %v4512_v42 = vld [vmem:[#allocation9 + $0x440] sm:$0xf]  ;;  %v4514_v43 = vld [vmem:[#allocation9 + $0x44c] sm:$0xf0]  ;;  %v162_v44 = vmul.f32 %v161_v39, %v4483_v27  ;;  %v158_v48 = vadd.f32 %v156_v38, %v152_v33  ;;  %v168_v49 = vmul.f32 %v167_v45, %v4494_v32  ;;  %v132_v18 = vmul.f32 %v131_v1, %v4483_v27  ;;  %v4597_v1 = vld [vmem:[#allocation9 + $0xe4] sm:$0xf]  ;;  %1860 = vmatpush.bf16.msrb.mxu2 %v3520_v40 }
  0x57   :  { %v3248_v54 = vor.u32 %v4514_v43, %v4512_v42  ;;  %v4529_v55 = vld [vmem:[#allocation9 + $0x540] sm:$0xf]  ;;  %v4531_v56 = vld [vmem:[#allocation9 + $0x54c] sm:$0xf0]  ;;  %v126_v21 = vadd.f32 %v124_v0, %v118_v58  ;;  %v140_v25 = vmul.f32 %v139_v19, %v4494_v32  ;;  %v127_v39 = vadd.f32 %v125_v6, %v119_v2  ;;  %v4599_v2 = vld [vmem:[#allocation9 + $0xf0] sm:$0xf0]  ;;  %1873 = vmatpush.bf16.msrb.mxu3 %v3648_v46 }
  0x58   :  { %v164_v57 = vadd.f32 %v162_v44, %v158_v48  ;;  %v4535_v61 = vld [vmem:[#allocation9 + $0x640] sm:$0xf]  ;;  %v4537_v62 = vld [vmem:[#allocation9 + $0x64c] sm:$0xf0]  ;;  %v3376_v41 = vor.u32 %v4531_v56, %v4529_v55  ;;  %v4601_v6 = vld [vmem:[#allocation9 + $0x1e4] sm:$0xf]  ;;  %v2820_v43 = vor.u32 %v4597_v1, %v4599_v2  ;;  %v207_v55 = vstv %s4621_s19 }
  0x59   :  { %v4539_v63 = vld [vmem:[#allocation9 + $0x740] sm:$0xf]  ;;  %v4545_v7 = vld [vmem:[#allocation9 + $0x74c] sm:$0xf0]  ;;  %v3504_v60 = vor.u32 %v4537_v62, %v4535_v61  ;;  %v135_v9 = vadd.f32 %v133_v50, %v127_v39  ;;  %v4613_v61 = vld [vmem:[#allocation9 + $0x2e4] sm:$0xf]  ;;  %1835 = vmatpush.bf16.msrb.mxu0 %v3248_v54  ;;  %v217_v2 = vstv %s4644_s20 }
  0x5a   :  { %v4547_v11 = vld [vmem:[#allocation9 + $0x420] sm:$0xf]  ;;  %v4549_v14 = vld [vmem:[#allocation9 + $0x42c] sm:$0xf0]  ;;  %v170_v15 = vadd.f32 %v168_v49, %v164_v57  ;;  %v175_v49 = vadd.f32 %v173_v51, %v171_v20  ;;  %v3632_v0 = vor.u32 %v4545_v7, %v4539_v63  ;;  %v4615_v62 = vld [vmem:[#allocation9 + $0x2f0] sm:$0xf0]  ;;  %1848 = vmatpush.bf16.msrb.mxu1 %v3376_v41 }
  0x5b   :  { %v4553_v28 = vld [vmem:[#allocation9 + $0x520] sm:$0xf]  ;;  %v4555_v33 = vld [vmem:[#allocation9 + $0x52c] sm:$0xf0]  ;;  %v3232_v29 = vor.u32 %v4549_v14, %v4547_v11  ;;  %v4617_v63 = vld [vmem:[#allocation9 + $0x3e4] sm:$0xf]  ;;  %v143_v30 = vadd.f32 %v141_v3, %v135_v9  ;;  %1861 = vmatpush.bf16.msrb.mxu2 %v3504_v60  ;;  %v3076_v39 = vor.u32 %v4613_v61, %v4615_v62  ;;  %v209_v60 = vmul.f32 %v207_v55, %v4443_v10 }
  0x5c   :  { %v4557_v34 = vld [vmem:[#allocation9 + $0x620] sm:$0xf]  ;;  %v4559_v37 = vld [vmem:[#allocation9 + $0x62c] sm:$0xf0]  ;;  %v174_v48 = vadd.f32 %v173_v51, %v170_v15  ;;  %v134_v51 = vadd.f32 %v132_v18, %v126_v21  ;;  %v4603_v15 = vld [vmem:[#allocation9 + $0x1f0] sm:$0xf0]  ;;  %v3360_v13 = vor.u32 %v4555_v33, %v4553_v28  ;;  %1874 = vmatpush.bf16.msrb.mxu3 %v3632_v0  ;;  %v223_v9 = vstv %s4659_s21 }
  0x5d   :  { %v4561_v38 = vld [vmem:[#allocation9 + $0x720] sm:$0xf]  ;;  %v4569_v44 = vld [vmem:[#allocation9 + $0x72c] sm:$0xf0]  ;;  %v177_v5 = vmax.f32 %v175_v49, 0.0  ;;  %v3488_v16 = vor.u32 %v4559_v37, %v4557_v34  ;;  %v147_v42 = vadd.f32 %v145_v59, %v143_v30  ;;  %v2948_v54 = vor.u32 %v4601_v6, %v4603_v15  ;;  %1836 = vmatpush.bf16.msrb.mxu0 %v3232_v29 }
  0x5e   :  { %v4571_v45 = vld [vmem:[#allocation9 + $0x400] sm:$0xf]  ;;  %v4573_v47 = vld [vmem:[#allocation9 + $0x40c] sm:$0xf0]  ;;  %v176_v19 = vmax.f32 %v174_v48, 0.0  ;;  %v142_v12 = vadd.f32 %v140_v25, %v134_v51  ;;  %v3616_v17 = vor.u32 %v4569_v44, %v4561_v38  ;;  %v208_v51 = vmul.f32 %v207_v55, %v4437_v8  ;;  %1849 = vmatpush.bf16.msrb.mxu1 %v3360_v13 }
  0x5f   :  { %v4577_v4 = vld [vmem:[#allocation9 + $0x500] sm:$0xf]  ;;  %v4579_v26 = vld [vmem:[#allocation9 + $0x50c] sm:$0xf0]  ;;  %v4619_v7 = vld [vmem:[#allocation9 + $0x3f0] sm:$0xf0]  ;;  %v4640_v23 = vpack.c.bf16 %v177_v5, %v177_v5  ;;  %v3216_v46 = vor.u32 %v4573_v47, %v4571_v45  ;;  %v218_v5 = vmul.f32 %v217_v2, %v4483_v27  ;;  %v219_v29 = vmul.f32 %v217_v2, %v4492_v31  ;;  %1862 = vmatpush.bf16.msrb.mxu2 %v3488_v16 }
  0x60   :  { %v4581_v52 = vld [vmem:[#allocation9 + $0x600] sm:$0xf]  ;;  %v4583_v53 = vld [vmem:[#allocation9 + $0x60c] sm:$0xf0]  ;;  %v4634_v35 = vld [vmem:[#allocation9 + $0xc4] sm:$0xf]  ;;  %v4638_v11 = vpack.c.bf16 %v176_v19, %v176_v19  ;;  %v146_v20 = vadd.f32 %v145_v59, %v142_v12  ;;  %v3344_v28 = vor.u32 %v4579_v26, %v4577_v4  ;;  %v3204_v45 = vor.u32 %v4617_v63, %v4619_v7  ;;  %1875 = vmatpush.bf16.msrb.mxu3 %v3616_v17 }
  0x61   :  { %v4585_v57 = vld [vmem:[#allocation9 + $0x700] sm:$0xf]  ;;  %v4587_v58 = vld [vmem:[#allocation9 + $0x70c] sm:$0xf0]  ;;  %v4636_v40 = vld [vmem:[#allocation9 + $0xd0] sm:$0xf0]  ;;  %v3472_v33 = vor.u32 %v4583_v53, %v4581_v52  ;;  %1825 = vmatmul.bf16.vlgmr.msra.gmra.mxu3 %v4640_v23  ;;  %v211_v59 = vstv %s4632_s3  ;;  %v224_v12 = vmul.f32 %v223_v9, %v4494_v32  ;;  %1837 = vmatpush.bf16.msrb.mxu0 %v3216_v46  ;;  %v229_v13 = vstv %s4671_s22 }
  0x62   :  { %v4646_v14 = vld [vmem:[#allocation9 + $0x1c4] sm:$0xf]  ;;  %v4648_v18 = vld [vmem:[#allocation9 + $0x1d0] sm:$0xf0]  ;;  %v3600_v34 = vor.u32 %v4587_v58, %v4585_v57  ;;  %1812 = vmatmul.bf16.vlgmr.msra.gmra.mxu2 %v4638_v11  ;;  %v148_v25 = vmax.f32 %v146_v20, 0.0  ;;  %v2804_v47 = vor.u32 %v4634_v35, %v4636_v40  ;;  %v149_v49 = vmax.f32 %v147_v42, 0.0  ;;  %1850 = vmatpush.bf16.msrb.mxu1 %v3344_v28 }
  0x63   :  { %v4661_v37 = vld [vmem:[#allocation9 + $0x2c4] sm:$0xf]  ;;  %v4663_v21 = vld [vmem:[#allocation9 + $0x2d0] sm:$0xf0]  ;;  %v2932_v56 = vor.u32 %v4646_v14, %v4648_v18  ;;  %v212_v1 = vmul.f32 %v211_v59, %v4471_v22  ;;  %v213_v6 = vmul.f32 %v211_v59, %v4477_v24  ;;  %v179_v20 = vstv %s4680_s0  ;;  %1863 = vmatpush.bf16.msrb.mxu2 %v3472_v33 }
  0x64   :  { %v4684_v48 = vld [vmem:[#allocation9 + $0x3c4] sm:$0xf]  ;;  %v3060_v41 = vor.u32 %v4661_v37, %v4663_v21  ;;  %v4693_v50 = vld [vmem:[#allocation9 + $0x3d0] sm:$0xf0]  ;;  %v4695_v3 = vpack.c.bf16 %v148_v25, %v148_v25  ;;  %v4702_v0 = vpack.c.bf16 %v149_v49, %v149_v49  ;;  %v225_v42 = vmul.f32 %v223_v9, %v4502_v36  ;;  %1876 = vmatpush.bf16.msrb.mxu3 %v3600_v34 }
  0x65   :  { %v4709_v15 = vld [vmem:[#allocation9 + $0xa4] sm:$0xf]  ;;  %v4711_v19 = vld [vmem:[#allocation9 + $0xb0] sm:$0xf0]  ;;  %v3188_v61 = vor.u32 %v4684_v48, %v4693_v50  ;;  %v214_v62 = vadd.f32 %v212_v1, %v208_v51  ;;  %v215_v30 = vadd.f32 %v213_v6, %v209_v60  ;;  %v180_v48 = vmul.f32 %v179_v20, %v4437_v8 }
  0x66   :  { %1786 = vmatmul.bf16.vlgmr.msra.gmra.mxu0 %v4695_v3  ;;  %1799 = vmatmul.bf16.vlgmr.msra.gmra.mxu1 %v4702_v0  ;;  %v2788_v16 = vor.u32 %v4709_v15, %v4711_v19  ;;  %v183_v49 = vstv %s4687_s23  ;;  %v189_v44 = vstv %s4699_s24  ;;  %v181_v17 = vmul.f32 %v179_v20, %v4443_v10  ;;  %v3905_v59 = vld [vmem:[#allocation9 + $0x1a4] sm:$0xf]  ;;  %v2913_v4 = vld [vmem:[#allocation9 + $0x1b0] sm:$0xf0] }
  0x67   :  { %1882 = vmatpush.bf16.msra.mxu0 %v2820_v43  ;;  %v220_v25 = vadd.f32 %v218_v5, %v214_v62  ;;  %v221_v55 = vadd.f32 %v219_v29, %v215_v30  ;;  %v184_v38 = vmul.f32 %v183_v49, %v4471_v22  ;;  %v185_v46 = vmul.f32 %v183_v49, %v4477_v24  ;;  %v3937_v26 = vld [vmem:[#allocation9 + $0x2a4] sm:$0xf]  ;;  %v3041_v52 = vld [vmem:[#allocation9 + $0x2b0] sm:$0xf0] }
  0x68   :  { %1895 = vmatpush.bf16.msra.mxu1 %v2948_v54  ;;  %v190_v8 = vmul.f32 %v189_v44, %v4483_v27  ;;  %v195_v50 = vstv %s4706_s25  ;;  %1908 = vmatpush.bf16.msra.mxu2 %v3076_v39  ;;  %v3969_v53 = vld [vmem:[#allocation9 + $0x3a4] sm:$0xf]  ;;  %v191_v57 = vmul.f32 %v189_v44, %v4492_v31  ;;  %v3169_v58 = vld [vmem:[#allocation9 + $0x3b0] sm:$0xf0]  ;;  %v2916_v39 = vor.u32 %v3905_v59, %v2913_v4 }
  0x69   :  { %v226_v43 = vadd.f32 %v224_v12, %v220_v25  ;;  %v227_v51 = vadd.f32 %v225_v42, %v221_v55  ;;  %v186_v10 = vadd.f32 %v184_v38, %v180_v48  ;;  %v196_v22 = vmul.f32 %v195_v50, %v4494_v32  ;;  %1921 = vmatpush.bf16.msra.mxu3 %v3204_v45  ;;  %v3869_v33 = vld [vmem:[#allocation9 + $0x84] sm:$0xf]  ;;  %v2769_v32 = vld [vmem:[#allocation9 + $0x90] sm:$0xf0] }
  0x6a   :  { %v187_v24 = vadd.f32 %v185_v46, %v181_v17  ;;  %v197_v54 = vmul.f32 %v195_v50, %v4502_v36  ;;  %v201_v1 = vstv %s4721_s26  ;;  %v3044_v31 = vor.u32 %v3937_v26, %v3041_v52  ;;  %v3901_v6 = vld [vmem:[#allocation9 + $0x184] sm:$0xf]  ;;  %v2897_v15 = vld [vmem:[#allocation9 + $0x190] sm:$0xf0] }
  0x6b   :  { %v230_v27 = vadd.f32 %v229_v13, %v226_v43  ;;  %v231_v28 = vadd.f32 %v229_v13, %v227_v51  ;;  %1883 = vmatpush.bf16.msra.mxu0 %v2804_v47  ;;  %v192_v34 = vadd.f32 %v190_v8, %v186_v10  ;;  %v3172_v35 = vor.u32 %v3969_v53, %v3169_v58  ;;  %v3933_v18 = vld [vmem:[#allocation9 + $0x284] sm:$0xf]  ;;  %v3153_v21 = vld [vmem:[#allocation9 + $0x390] sm:$0xf0] }
  0x6c   :  { %1896 = vmatpush.bf16.msra.mxu1 %v2932_v56  ;;  %v193_v63 = vadd.f32 %v191_v57, %v187_v24  ;;  %1909 = vmatpush.bf16.msra.mxu2 %v3060_v41  ;;  %v2772_v40 = vor.u32 %v3869_v33, %v2769_v32  ;;  %v3025_v56 = vld [vmem:[#allocation9 + $0x290] sm:$0xf0]  ;;  %v3965_v19 = vld [vmem:[#allocation9 + $0x384] sm:$0xf]  ;;  %v2900_v29 = vor.u32 %v3901_v6, %v2897_v15 }
  0x6d   :  { %v232_v60 = vmax.f32 %v230_v27, 0.0  ;;  %v233_v2 = vmax.f32 %v231_v28, 0.0  ;;  %v198_v7 = vadd.f32 %v196_v22, %v192_v34  ;;  %1922 = vmatpush.bf16.msra.mxu3 %v3188_v61  ;;  %v3865_v41 = vld [vmem:[#allocation9 + $0x64] sm:$0xf]  ;;  %v2753_v5 = vld [vmem:[#allocation9 + $0x70] sm:$0xf0]  ;;  %v3028_v62 = vor.u32 %v3933_v18, %v3025_v56 }
  0x6e   :  { %v199_v47 = vadd.f32 %v197_v54, %v193_v63  ;;  %v3897_v12 = vld [vmem:[#allocation9 + $0x164] sm:$0xf]  ;;  %v2881_v30 = vld [vmem:[#allocation9 + $0x170] sm:$0xf0]  ;;  %v3156_v20 = vor.u32 %v3965_v19, %v3153_v21  ;;  %v2756_v42 = vor.u32 %v3865_v41, %v2753_v5 }
  0x6f   :  { %v4764_v45 = vpack.c.bf16 %v232_v60, %v232_v60  ;;  %v4766_v36 = vpack.c.bf16 %v233_v2, %v233_v2  ;;  %1884 = vmatpush.bf16.msra.mxu0 %v2788_v16  ;;  %v202_v14 = vadd.f32 %v201_v1, %v198_v7  ;;  %v3929_v16 = vld [vmem:[#allocation9 + $0x264] sm:$0xf]  ;;  %v3009_v25 = vld [vmem:[#allocation9 + $0x270] sm:$0xf0]  ;;  %v2884_v17 = vor.u32 %v3897_v12, %v2881_v30 }
  0x70   :  { %v203_v37 = vadd.f32 %v201_v1, %v199_v47  ;;  %1897 = vmatpush.bf16.msra.mxu1 %v2916_v39  ;;  %1910 = vmatpush.bf16.msra.mxu2 %v3044_v31  ;;  %v3961_v48 = vld [vmem:[#allocation9 + $0x364] sm:$0xf]  ;;  %v3137_v55 = vld [vmem:[#allocation9 + $0x370] sm:$0xf0]  ;;  %v3012_v46 = vor.u32 %v3929_v16, %v3009_v25 }
  0x71   :  { %1877 = vmatmul.bf16.vlgmr.msrb.gmra.mxu3 %v4766_v36  ;;  %v204_v9 = vmax.f32 %v202_v14, 0.0  ;;  %v3861_v38 = vld [vmem:[#allocation9 + $0x44] sm:$0xf]  ;;  %v2737_v44 = vld [vmem:[#allocation9 + $0x50] sm:$0xf0]  ;;  %v3140_v50 = vor.u32 %v3961_v48, %v3137_v55 }
  0x72   :  { %1864 = vmatmul.bf16.vlgmr.msrb.gmra.mxu2 %v4764_v45  ;;  %v205_v61 = vmax.f32 %v203_v37, 0.0  ;;  %1923 = vmatpush.bf16.msra.mxu3 %v3172_v35  ;;  %v3893_v43 = vld [vmem:[#allocation9 + $0x144] sm:$0xf]  ;;  %v2865_v8 = vld [vmem:[#allocation9 + $0x150] sm:$0xf0]  ;;  %v2740_v51 = vor.u32 %v3861_v38, %v2737_v44 }
  0x73   :  { %1885 = vmatpush.bf16.msra.mxu0 %v2772_v40  ;;  %v4770_v13 = vpack.c.bf16 %v204_v9, %v204_v9  ;;  %v3925_v59 = vld [vmem:[#allocation9 + $0x244] sm:$0xf]  ;;  %v2993_v4 = vld [vmem:[#allocation9 + $0x250] sm:$0xf0]  ;;  %v2868_v52 = vor.u32 %v3893_v43, %v2865_v8 }
  0x74   :  { %v4772_v49 = vpack.c.bf16 %v205_v61, %v205_v61  ;;  %1898 = vmatpush.bf16.msra.mxu1 %v2900_v29  ;;  %1911 = vmatpush.bf16.msra.mxu2 %v3028_v62  ;;  %v3957_v10 = vld [vmem:[#allocation9 + $0x344] sm:$0xf]  ;;  %v3121_v22 = vld [vmem:[#allocation9 + $0x350] sm:$0xf0]  ;;  %v2996_v53 = vor.u32 %v3925_v59, %v2993_v4 }
  0x75   :  { %v3857_v24 = vld [vmem:[#allocation9 + $0x24] sm:$0xf]  ;;  %v2721_v26 = vld [vmem:[#allocation9 + $0x30] sm:$0xf0]  ;;  %v3124_v58 = vor.u32 %v3957_v10, %v3121_v22 }
  0x76   :  { %1838 = vmatmul.bf16.vlgmr.msrb.gmra.mxu0 %v4770_v13  ;;  %1851 = vmatmul.bf16.vlgmr.msrb.gmra.mxu1 %v4772_v49  ;;  %v3889_v27 = vld [vmem:[#allocation9 + $0x124] sm:$0xf]  ;;  %v2849_v28 = vld [vmem:[#allocation9 + $0x130] sm:$0xf0]  ;;  %v2724_v33 = vor.u32 %v3857_v24, %v2721_v26 }
  0x77   :  { %1924 = vmatpush.bf16.msra.mxu3 %v3156_v20  ;;  %1886 = vmatpush.bf16.msra.mxu0 %v2756_v42  ;;  %v3921_v57 = vld [vmem:[#allocation9 + $0x224] sm:$0xf]  ;;  %v2977_v32 = vld [vmem:[#allocation9 + $0x230] sm:$0xf0]  ;;  %v2852_v2 = vor.u32 %v3889_v27, %v2849_v28 }
  0x78   :  { %1899 = vmatpush.bf16.msra.mxu1 %v2884_v17  ;;  %1912 = vmatpush.bf16.msra.mxu2 %v3012_v46  ;;  %v3953_v34 = vld [vmem:[#allocation9 + $0x324] sm:$0xf]  ;;  %v3105_v54 = vld [vmem:[#allocation9 + $0x330] sm:$0xf0]  ;;  %v2980_v35 = vor.u32 %v3921_v57, %v2977_v32 }
  0x79   :  { %v3853_v39 = vld [vmem:[#allocation9 + $0x4] sm:$0xf]  ;;  %v2705_v60 = vld [vmem:[#allocation9 + $0x10] sm:$0xf0]  ;;  %v3108_v15 = vor.u32 %v3953_v34, %v3105_v54 }
  0x7a   :  { %v3885_v1 = vld [vmem:[#allocation9 + $0x104] sm:$0xf]  ;;  %v2833_v63 = vld [vmem:[#allocation9 + $0x110] sm:$0xf0]  ;;  %v2708_v14 = vor.u32 %v3853_v39, %v2705_v60 }
  0x7b   :  { %1925 = vmatpush.bf16.msra.mxu3 %v3140_v50  ;;  %1887 = vmatpush.bf16.msra.mxu0 %v2740_v51  ;;  %v4009_v7 = vld [vmem:[#allocation9 + $0x4e4] sm:$0xf]  ;;  %v3329_v31 = vld [vmem:[#allocation9 + $0x4f0] sm:$0xf0]  ;;  %v2836_v9 = vor.u32 %v3885_v1, %v2833_v63 }
  0x7c   :  { %1900 = vmatpush.bf16.msra.mxu1 %v2868_v52  ;;  %1913 = vmatpush.bf16.msra.mxu2 %v2996_v53  ;;  %v3917_v40 = vld [vmem:[#allocation9 + $0x204] sm:$0xf]  ;;  %v2961_v47 = vld [vmem:[#allocation9 + $0x210] sm:$0xf0]  ;;  %v3332_v37 = vor.u32 %v4009_v7, %v3329_v31 }
  0x7d   :  { %v3949_v6 = vld [vmem:[#allocation9 + $0x304] sm:$0xf]  ;;  %v3089_v18 = vld [vmem:[#allocation9 + $0x310] sm:$0xf0]  ;;  %v2964_v12 = vor.u32 %v3917_v40, %v2961_v47 }
  0x7e   :  { %v4041_v56 = vld [vmem:[#allocation9 + $0x5e4] sm:$0xf]  ;;  %v3457_v19 = vld [vmem:[#allocation9 + $0x5f0] sm:$0xf0]  ;;  %v3092_v20 = vor.u32 %v3949_v6, %v3089_v18 }
  0x7f   :  { %1926 = vmatpush.bf16.msra.mxu3 %v3124_v58  ;;  %1888 = vmatpush.bf16.msra.mxu0 %v2724_v33  ;;  %v4073_v21 = vld [vmem:[#allocation9 + $0x6e4] sm:$0xf]  ;;  %v3585_v41 = vld [vmem:[#allocation9 + $0x6f0] sm:$0xf0]  ;;  %v3460_v30 = vor.u32 %v4041_v56, %v3457_v19 }
  0x80   :  { %v4105_v5 = vld [vmem:[#allocation9 + $0x7e4] sm:$0xf]  ;;  %1901 = vmatpush.bf16.msra.mxu1 %v2852_v2  ;;  %v3713_v29 = vld [vmem:[#allocation9 + $0x7f0] sm:$0xf0]  ;;  %1914 = vmatpush.bf16.msra.mxu2 %v2980_v35  ;;  %v3588_v42 = vor.u32 %v4073_v21, %v3585_v41 }
  0x81   :  { %v4005_v61 = vld [vmem:[#allocation9 + $0x4c4] sm:$0xf]  ;;  %v3313_v62 = vld [vmem:[#allocation9 + $0x4d0] sm:$0xf0]  ;;  %v3716_v48 = vor.u32 %v4105_v5, %v3713_v29 }
  0x82   :  { %v4037_v16 = vld [vmem:[#allocation9 + $0x5c4] sm:$0xf]  ;;  %v3441_v25 = vld [vmem:[#allocation9 + $0x5d0] sm:$0xf0]  ;;  %v3316_v55 = vor.u32 %v4005_v61, %v3313_v62 }
  0x83   :  { %1927 = vmatpush.bf16.msra.mxu3 %v3108_v15  ;;  %1889 = vmatpush.bf16.msra.mxu0 %v2708_v14  ;;  %v4069_v38 = vld [vmem:[#allocation9 + $0x6c4] sm:$0xf]  ;;  %v3569_v44 = vld [vmem:[#allocation9 + $0x6d0] sm:$0xf0]  ;;  %v3444_v50 = vor.u32 %v4037_v16, %v3441_v25 }
  0x84   :  { %v4101_v17 = vld [vmem:[#allocation9 + $0x7c4] sm:$0xf]  ;;  %1902 = vmatpush.bf16.msra.mxu1 %v2836_v9  ;;  %v3697_v46 = vld [vmem:[#allocation9 + $0x7d0] sm:$0xf0]  ;;  %1915 = vmatpush.bf16.msra.mxu2 %v2964_v12  ;;  %v3572_v51 = vor.u32 %v4069_v38, %v3569_v44 }
  0x85   :  { %v4001_v43 = vld [vmem:[#allocation9 + $0x4a4] sm:$0xf]  ;;  %v3297_v8 = vld [vmem:[#allocation9 + $0x4b0] sm:$0xf0]  ;;  %v3700_v10 = vor.u32 %v4101_v17, %v3697_v46 }
  0x86   :  { %v4033_v59 = vld [vmem:[#allocation9 + $0x5a4] sm:$0xf]  ;;  %v3425_v4 = vld [vmem:[#allocation9 + $0x5b0] sm:$0xf0]  ;;  %v3300_v22 = vor.u32 %v4001_v43, %v3297_v8  ;;  %1890 = vmatmul.bf16.vlgmr.msra.gmra.mxu0 %v4695_v3 }
  0x87   :  { %1934 = vmatpush.bf16.msrb.mxu0 %v3332_v37  ;;  %1928 = vmatpush.bf16.msra.mxu3 %v3092_v20  ;;  %v4065_v24 = vld [vmem:[#allocation9 + $0x6a4] sm:$0xf]  ;;  %v3553_v26 = vld [vmem:[#allocation9 + $0x6b0] sm:$0xf0]  ;;  %v3428_v57 = vor.u32 %v4033_v59, %v3425_v4 }
  0x88   :  { %1947 = vmatpush.bf16.msrb.mxu1 %v3460_v30  ;;  %1960 = vmatpush.bf16.msrb.mxu2 %v3588_v42  ;;  %v4097_v52 = vld [vmem:[#allocation9 + $0x7a4] sm:$0xf]  ;;  %v3681_v53 = vld [vmem:[#allocation9 + $0x7b0] sm:$0xf0]  ;;  %v3556_v58 = vor.u32 %v4065_v24, %v3553_v26  ;;  %v2823_v24 = vld [vmem:[#allocation9 + $0xe8] sm:$0xf] }
  0x89   :  { %v3997_v27 = vld [vmem:[#allocation9 + $0x484] sm:$0xf]  ;;  %v3281_v28 = vld [vmem:[#allocation9 + $0x490] sm:$0xf0]  ;;  %1916 = vmatmul.bf16.vlgmr.msra.gmra.mxu2 %v4638_v11  ;;  %1903 = vmatmul.bf16.vlgmr.msra.gmra.mxu1 %v4702_v0  ;;  %v3684_v34 = vor.u32 %v4097_v52, %v3681_v53  ;;  %v3884_v26 = vld [vmem:[#allocation9 + $0xf4] sm:$0xf0] }
  0x8a   :  { %1929 = vmatmul.bf16.vlgmr.msra.gmra.mxu3 %v4640_v23  ;;  %v4029_v33 = vld [vmem:[#allocation9 + $0x584] sm:$0xf]  ;;  %v3409_v32 = vld [vmem:[#allocation9 + $0x590] sm:$0xf0]  ;;  %v3284_v54 = vor.u32 %v3997_v27, %v3281_v28 }
  0x8b   :  { %1973 = vmatpush.bf16.msrb.mxu3 %v3716_v48  ;;  %1935 = vmatpush.bf16.msrb.mxu0 %v3316_v55  ;;  %v4061_v39 = vld [vmem:[#allocation9 + $0x684] sm:$0xf]  ;;  %v3537_v60 = vld [vmem:[#allocation9 + $0x690] sm:$0xf0]  ;;  %v3412_v31 = vor.u32 %v4029_v33, %v3409_v32  ;;  %v2951_v32 = vld [vmem:[#allocation9 + $0x1e8] sm:$0xf] }
  0x8c   :  { %1948 = vmatpush.bf16.msrb.mxu1 %v3444_v50  ;;  %1961 = vmatpush.bf16.msrb.mxu2 %v3572_v51  ;;  %v4093_v1 = vld [vmem:[#allocation9 + $0x784] sm:$0xf]  ;;  %v3665_v2 = vld [vmem:[#allocation9 + $0x790] sm:$0xf0]  ;;  %v3540_v35 = vor.u32 %v4061_v39, %v3537_v60  ;;  %v2824_v39 = vor.u32 %v3884_v26, %v2823_v24  ;;  %v3079_v60 = vld [vmem:[#allocation9 + $0x2e8] sm:$0xf] }
  0x8d   :  { %v3993_v63 = vld [vmem:[#allocation9 + $0x464] sm:$0xf]  ;;  %v3265_v7 = vld [vmem:[#allocation9 + $0x470] sm:$0xf0]  ;;  %v3668_v6 = vor.u32 %v4093_v1, %v3665_v2  ;;  %v3948_v1 = vld [vmem:[#allocation9 + $0x2f4] sm:$0xf0] }
  0x8e   :  { %v4025_v40 = vld [vmem:[#allocation9 + $0x564] sm:$0xf]  ;;  %v3393_v47 = vld [vmem:[#allocation9 + $0x570] sm:$0xf0]  ;;  %v3268_v15 = vor.u32 %v3993_v63, %v3265_v7  ;;  %v3207_v63 = vld [vmem:[#allocation9 + $0x3e8] sm:$0xf] }
  0x8f   :  { %1974 = vmatpush.bf16.msrb.mxu3 %v3700_v10  ;;  %1936 = vmatpush.bf16.msrb.mxu0 %v3300_v22  ;;  %v4057_v14 = vld [vmem:[#allocation9 + $0x664] sm:$0xf]  ;;  %v3521_v18 = vld [vmem:[#allocation9 + $0x670] sm:$0xf0]  ;;  %v3396_v41 = vor.u32 %v4025_v40, %v3393_v47  ;;  %v3980_v7 = vld [vmem:[#allocation9 + $0x3f4] sm:$0xf0] }
  0x90   :  { %1949 = vmatpush.bf16.msrb.mxu1 %v3428_v57  ;;  %1962 = vmatpush.bf16.msrb.mxu2 %v3556_v58  ;;  %v4089_v56 = vld [vmem:[#allocation9 + $0x764] sm:$0xf]  ;;  %v3649_v19 = vld [vmem:[#allocation9 + $0x770] sm:$0xf0]  ;;  %v3524_v5 = vor.u32 %v4057_v14, %v3521_v18  ;;  %v2807_v40 = vld [vmem:[#allocation9 + $0xc8] sm:$0xf] }
  0x91   :  { %v3989_v37 = vld [vmem:[#allocation9 + $0x444] sm:$0xf]  ;;  %v3249_v21 = vld [vmem:[#allocation9 + $0x450] sm:$0xf0]  ;;  %v3652_v62 = vor.u32 %v4089_v56, %v3649_v19  ;;  %v3880_v47 = vld [vmem:[#allocation9 + $0xd4] sm:$0xf0]  ;;  %v3208_v56 = vor.u32 %v3980_v7, %v3207_v63 }
  0x92   :  { %v4021_v9 = vld [vmem:[#allocation9 + $0x544] sm:$0xf]  ;;  %v3377_v29 = vld [vmem:[#allocation9 + $0x550] sm:$0xf0]  ;;  %v3252_v12 = vor.u32 %v3989_v37, %v3249_v21  ;;  %v2935_v14 = vld [vmem:[#allocation9 + $0x1c8] sm:$0xf]  ;;  %v2808_v21 = vor.u32 %v3880_v47, %v2807_v40 }
  0x93   :  { %1975 = vmatpush.bf16.msrb.mxu3 %v3684_v34  ;;  %1937 = vmatpush.bf16.msrb.mxu0 %v3284_v54  ;;  %v4053_v61 = vld [vmem:[#allocation9 + $0x644] sm:$0xf]  ;;  %v3505_v30 = vld [vmem:[#allocation9 + $0x650] sm:$0xf0]  ;;  %v3380_v48 = vor.u32 %v4021_v9, %v3377_v29  ;;  %v3916_v34 = vld [vmem:[#allocation9 + $0x1f4] sm:$0xf0] }
  0x94   :  { %1950 = vmatpush.bf16.msrb.mxu1 %v3412_v31  ;;  %1963 = vmatpush.bf16.msrb.mxu2 %v3540_v35  ;;  %v4085_v20 = vld [vmem:[#allocation9 + $0x744] sm:$0xf]  ;;  %v3633_v42 = vld [vmem:[#allocation9 + $0x750] sm:$0xf0]  ;;  %v3508_v55 = vor.u32 %v4053_v61, %v3505_v30  ;;  %v2952_v35 = vor.u32 %v3916_v34, %v2951_v32  ;;  %v3912_v18 = vld [vmem:[#allocation9 + $0x1d4] sm:$0xf0] }
  0x95   :  { %v3985_v16 = vld [vmem:[#allocation9 + $0x424] sm:$0xf]  ;;  %v3233_v25 = vld [vmem:[#allocation9 + $0x430] sm:$0xf0]  ;;  %v3636_v17 = vor.u32 %v4085_v20, %v3633_v42  ;;  %v3063_v19 = vld [vmem:[#allocation9 + $0x2c8] sm:$0xf]  ;;  %v2936_v9 = vor.u32 %v3912_v18, %v2935_v14 }
  0x96   :  { %v4017_v38 = vld [vmem:[#allocation9 + $0x524] sm:$0xf]  ;;  %v3361_v44 = vld [vmem:[#allocation9 + $0x530] sm:$0xf0]  ;;  %v3236_v46 = vor.u32 %v3985_v16, %v3233_v25  ;;  %v3944_v37 = vld [vmem:[#allocation9 + $0x2d4] sm:$0xf0] }
  0x97   :  { %1976 = vmatpush.bf16.msrb.mxu3 %v3668_v6  ;;  %1938 = vmatpush.bf16.msrb.mxu0 %v3268_v15  ;;  %v4049_v43 = vld [vmem:[#allocation9 + $0x624] sm:$0xf]  ;;  %v3489_v8 = vld [vmem:[#allocation9 + $0x630] sm:$0xf0]  ;;  %v3364_v10 = vor.u32 %v4017_v38, %v3361_v44  ;;  %v3080_v15 = vor.u32 %v3948_v1, %v3079_v60  ;;  %v2791_v29 = vld [vmem:[#allocation9 + $0xa8] sm:$0xf] }
  0x98   :  { %1951 = vmatpush.bf16.msrb.mxu1 %v3396_v41  ;;  %1964 = vmatpush.bf16.msrb.mxu2 %v3524_v5  ;;  %v4081_v50 = vld [vmem:[#allocation9 + $0x724] sm:$0xf]  ;;  %v3617_v51 = vld [vmem:[#allocation9 + $0x730] sm:$0xf0]  ;;  %v3492_v52 = vor.u32 %v4049_v43, %v3489_v8  ;;  %v3191_v41 = vld [vmem:[#allocation9 + $0x3c8] sm:$0xf] }
  0x99   :  { %v3981_v59 = vld [vmem:[#allocation9 + $0x404] sm:$0xf]  ;;  %v3217_v4 = vld [vmem:[#allocation9 + $0x410] sm:$0xf0]  ;;  %v3620_v57 = vor.u32 %v4081_v50, %v3617_v51  ;;  %v3976_v5 = vld [vmem:[#allocation9 + $0x3d4] sm:$0xf0] }
  0x9a   :  { %v4013_v22 = vld [vmem:[#allocation9 + $0x504] sm:$0xf]  ;;  %v3345_v53 = vld [vmem:[#allocation9 + $0x510] sm:$0xf0]  ;;  %v3220_v58 = vor.u32 %v3981_v59, %v3217_v4  ;;  %v3876_v61 = vld [vmem:[#allocation9 + $0xb4] sm:$0xf0]  ;;  %v3192_v20 = vor.u32 %v3976_v5, %v3191_v41 }
  0x9b   :  { %1977 = vmatpush.bf16.msrb.mxu3 %v3652_v62  ;;  %1939 = vmatpush.bf16.msrb.mxu0 %v3252_v12  ;;  %v4045_v27 = vld [vmem:[#allocation9 + $0x604] sm:$0xf]  ;;  %v3473_v28 = vld [vmem:[#allocation9 + $0x610] sm:$0xf0]  ;;  %v3348_v2 = vor.u32 %v4013_v22, %v3345_v53  ;;  %v3064_v62 = vor.u32 %v3944_v37, %v3063_v19  ;;  %v2919_v12 = vld [vmem:[#allocation9 + $0x1a8] sm:$0xf]  ;;  %v2792_v25 = vor.u32 %v3876_v61, %v2791_v29 }
  0x9c   :  { %1952 = vmatpush.bf16.msrb.mxu1 %v3380_v48  ;;  %1965 = vmatpush.bf16.msrb.mxu2 %v3508_v55  ;;  %v4077_v33 = vld [vmem:[#allocation9 + $0x704] sm:$0xf]  ;;  %v3601_v54 = vld [vmem:[#allocation9 + $0x710] sm:$0xf0]  ;;  %v3476_v31 = vor.u32 %v4045_v27, %v3473_v28  ;;  %v3908_v30 = vld [vmem:[#allocation9 + $0x1b4] sm:$0xf0] }
  0x9d   :  { %v3604_v6 = vor.u32 %v4077_v33, %v3601_v54  ;;  %v3047_v42 = vld [vmem:[#allocation9 + $0x2a8] sm:$0xf]  ;;  %v3940_v16 = vld [vmem:[#allocation9 + $0x2b4] sm:$0xf0]  ;;  %v2920_v38 = vor.u32 %v3908_v30, %v2919_v12 }
  0x9e   :  { %v3175_v48 = vld [vmem:[#allocation9 + $0x3a8] sm:$0xf]  ;;  %v3972_v55 = vld [vmem:[#allocation9 + $0x3b4] sm:$0xf0] }
  0x9f   :  { %1978 = vmatpush.bf16.msrb.mxu3 %v3636_v17  ;;  %1940 = vmatpush.bf16.msrb.mxu0 %v3236_v46  ;;  %v2775_v44 = vld [vmem:[#allocation9 + $0x88] sm:$0xf]  ;;  %v3872_v17 = vld [vmem:[#allocation9 + $0x94] sm:$0xf0]  ;;  %v3048_v46 = vor.u32 %v3940_v16, %v3047_v42  ;;  %v3176_v50 = vor.u32 %v3972_v55, %v3175_v48 }
  0xa0   :  { %1953 = vmatpush.bf16.msrb.mxu1 %v3364_v10  ;;  %1966 = vmatpush.bf16.msrb.mxu2 %v3492_v52  ;;  %v2903_v43 = vld [vmem:[#allocation9 + $0x188] sm:$0xf]  ;;  %v3904_v8 = vld [vmem:[#allocation9 + $0x194] sm:$0xf0]  ;;  %v2776_v4 = vor.u32 %v3872_v17, %v2775_v44 }
  0xa1   :  { %v3031_v51 = vld [vmem:[#allocation9 + $0x288] sm:$0xf]  ;;  %v3936_v59 = vld [vmem:[#allocation9 + $0x294] sm:$0xf0]  ;;  %v2904_v24 = vor.u32 %v3904_v8, %v2903_v43 }
  0xa2   :  { %v3159_v10 = vld [vmem:[#allocation9 + $0x388] sm:$0xf]  ;;  %v3968_v22 = vld [vmem:[#allocation9 + $0x394] sm:$0xf0]  ;;  %v3032_v53 = vor.u32 %v3936_v59, %v3031_v51 }
  0xa3   :  { %1979 = vmatpush.bf16.msrb.mxu3 %v3620_v57  ;;  %1941 = vmatpush.bf16.msrb.mxu0 %v3220_v58  ;;  %v2759_v26 = vld [vmem:[#allocation9 + $0x68] sm:$0xf]  ;;  %v3868_v52 = vld [vmem:[#allocation9 + $0x74] sm:$0xf0]  ;;  %v3160_v57 = vor.u32 %v3968_v22, %v3159_v10 }
  0xa4   :  { %1954 = vmatpush.bf16.msrb.mxu1 %v3348_v2  ;;  %1967 = vmatpush.bf16.msrb.mxu2 %v3476_v31  ;;  %v2887_v27 = vld [vmem:[#allocation9 + $0x168] sm:$0xf]  ;;  %v3900_v28 = vld [vmem:[#allocation9 + $0x174] sm:$0xf0]  ;;  %v2760_v32 = vor.u32 %v3868_v52, %v2759_v26 }
  0xa5   :  { %v3015_v58 = vld [vmem:[#allocation9 + $0x268] sm:$0xf]  ;;  %v3932_v33 = vld [vmem:[#allocation9 + $0x274] sm:$0xf0] }
  0xa6   :  { %1942 = vmatmul.bf16.vlgmr.msrb.gmra.mxu0 %v4770_v13  ;;  %v3143_v34 = vld [vmem:[#allocation9 + $0x368] sm:$0xf]  ;;  %v3964_v54 = vld [vmem:[#allocation9 + $0x374] sm:$0xf0]  ;;  %v3016_v2 = vor.u32 %v3932_v33, %v3015_v58 }
  0xa7   :  { %1986 = vmatpush.bf16.msra.mxu0 %v2824_v39  ;;  %1980 = vmatpush.bf16.msrb.mxu3 %v3604_v6  ;;  %v2888_v39 = vor.u32 %v3900_v28, %v2887_v27  ;;  %v2743_v60 = vld [vmem:[#allocation9 + $0x48] sm:$0xf]  ;;  %v3864_v1 = vld [vmem:[#allocation9 + $0x54] sm:$0xf0]  ;;  %v3144_v31 = vor.u32 %v3964_v54, %v3143_v34 }
  0xa8   :  { %1999 = vmatpush.bf16.msra.mxu1 %v2952_v35  ;;  %2012 = vmatpush.bf16.msra.mxu2 %v3080_v15  ;;  %v2871_v63 = vld [vmem:[#allocation9 + $0x148] sm:$0xf]  ;;  %v3896_v7 = vld [vmem:[#allocation9 + $0x154] sm:$0xf0]  ;;  %v2744_v47 = vor.u32 %v3864_v1, %v2743_v60 }
  0xa9   :  { %1968 = vmatmul.bf16.vlgmr.msrb.gmra.mxu2 %v4764_v45  ;;  %1955 = vmatmul.bf16.vlgmr.msrb.gmra.mxu1 %v4772_v49  ;;  %v2999_v35 = vld [vmem:[#allocation9 + $0x248] sm:$0xf]  ;;  %v3928_v40 = vld [vmem:[#allocation9 + $0x254] sm:$0xf0]  ;;  %v2872_v14 = vor.u32 %v3896_v7, %v2871_v63 }
  0xaa   :  { %1981 = vmatmul.bf16.vlgmr.msrb.gmra.mxu3 %v4766_v36  ;;  %v3127_v6 = vld [vmem:[#allocation9 + $0x348] sm:$0xf]  ;;  %v3960_v15 = vld [vmem:[#allocation9 + $0x354] sm:$0xf0]  ;;  %v3000_v19 = vor.u32 %v3928_v40, %v2999_v35 }
  0xab   :  { %2025 = vmatpush.bf16.msra.mxu3 %v3208_v56  ;;  %1987 = vmatpush.bf16.msra.mxu0 %v2808_v21  ;;  %v2727_v18 = vld [vmem:[#allocation9 + $0x28] sm:$0xf]  ;;  %v3860_v56 = vld [vmem:[#allocation9 + $0x34] sm:$0xf0]  ;;  %v3128_v41 = vor.u32 %v3960_v15, %v3127_v6 }
  0xac   :  { %2000 = vmatpush.bf16.msra.mxu1 %v2936_v9  ;;  %2013 = vmatpush.bf16.msra.mxu2 %v3064_v62  ;;  %v2855_v37 = vld [vmem:[#allocation9 + $0x128] sm:$0xf]  ;;  %v3892_v21 = vld [vmem:[#allocation9 + $0x134] sm:$0xf0]  ;;  %v2728_v61 = vor.u32 %v3860_v56, %v2727_v18 }
  0xad   :  { %v2983_v5 = vld [vmem:[#allocation9 + $0x228] sm:$0xf]  ;;  %v3924_v9 = vld [vmem:[#allocation9 + $0x234] sm:$0xf0] }
  0xae   :  { %v3111_v29 = vld [vmem:[#allocation9 + $0x328] sm:$0xf]  ;;  %v3956_v62 = vld [vmem:[#allocation9 + $0x334] sm:$0xf0]  ;;  %v2984_v48 = vor.u32 %v3924_v9, %v2983_v5 }
  0xaf   :  { %2026 = vmatpush.bf16.msra.mxu3 %v3192_v20  ;;  %1988 = vmatpush.bf16.msra.mxu0 %v2792_v25  ;;  %v2711_v12 = vld [vmem:[#allocation9 + $0x8] sm:$0xf]  ;;  %v3856_v30 = vld [vmem:[#allocation9 + $0x14] sm:$0xf0]  ;;  %v2856_v20 = vor.u32 %v3892_v21, %v2855_v37  ;;  %v3112_v17 = vor.u32 %v3956_v62, %v3111_v29 }
  0xb0   :  { %2001 = vmatpush.bf16.msra.mxu1 %v2920_v38  ;;  %2014 = vmatpush.bf16.msra.mxu2 %v3048_v46  ;;  %v2839_v42 = vld [vmem:[#allocation9 + $0x108] sm:$0xf]  ;;  %v3888_v16 = vld [vmem:[#allocation9 + $0x114] sm:$0xf0] }
  0xb1   :  { %v2967_v25 = vld [vmem:[#allocation9 + $0x208] sm:$0xf]  ;;  %v3920_v55 = vld [vmem:[#allocation9 + $0x214] sm:$0xf0]  ;;  %v2840_v10 = vor.u32 %v3888_v16, %v2839_v42 }
  0xb2   :  { %v3335_v38 = vld [vmem:[#allocation9 + $0x4e8] sm:$0xf]  ;;  %v4012_v44 = vld [vmem:[#allocation9 + $0x4f4] sm:$0xf0]  ;;  %v2968_v52 = vor.u32 %v3920_v55, %v2967_v25 }
  0xb3   :  { %2027 = vmatpush.bf16.msra.mxu3 %v3176_v50  ;;  %1989 = vmatpush.bf16.msra.mxu0 %v2776_v4  ;;  %v3095_v46 = vld [vmem:[#allocation9 + $0x308] sm:$0xf]  ;;  %v4044_v8 = vld [vmem:[#allocation9 + $0x5f4] sm:$0xf0]  ;;  %v2712_v50 = vor.u32 %v3856_v30, %v2711_v12  ;;  %v3336_v22 = vor.u32 %v4012_v44, %v3335_v38 }
  0xb4   :  { %2002 = vmatpush.bf16.msra.mxu1 %v2904_v24  ;;  %2015 = vmatpush.bf16.msra.mxu2 %v3032_v53  ;;  %v3463_v43 = vld [vmem:[#allocation9 + $0x5e8] sm:$0xf]  ;;  %v3952_v51 = vld [vmem:[#allocation9 + $0x314] sm:$0xf0] }
  0xb5   :  { %v3591_v59 = vld [vmem:[#allocation9 + $0x6e8] sm:$0xf]  ;;  %v4076_v4 = vld [vmem:[#allocation9 + $0x6f4] sm:$0xf0]  ;;  %v3464_v53 = vor.u32 %v4044_v8, %v3463_v43 }
  0xb6   :  { %v3719_v24 = vld [vmem:[#allocation9 + $0x7e8] sm:$0xf]  ;;  %v4108_v26 = vld [vmem:[#allocation9 + $0x7f4] sm:$0xf0]  ;;  %v3592_v58 = vor.u32 %v4076_v4, %v3591_v59 }
  0xb7   :  { %2028 = vmatpush.bf16.msra.mxu3 %v3160_v57  ;;  %1990 = vmatpush.bf16.msra.mxu0 %v2760_v32  ;;  %v3319_v27 = vld [vmem:[#allocation9 + $0x4c8] sm:$0xf]  ;;  %v4008_v28 = vld [vmem:[#allocation9 + $0x4d4] sm:$0xf0]  ;;  %v3096_v57 = vor.u32 %v3952_v51, %v3095_v46  ;;  %v3720_v34 = vor.u32 %v4108_v26, %v3719_v24 }
  0xb8   :  { %2003 = vmatpush.bf16.msra.mxu1 %v2888_v39  ;;  %2016 = vmatpush.bf16.msra.mxu2 %v3016_v2  ;;  %v3447_v33 = vld [vmem:[#allocation9 + $0x5c8] sm:$0xf]  ;;  %v4040_v32 = vld [vmem:[#allocation9 + $0x5d4] sm:$0xf0]  ;;  %v3320_v60 = vor.u32 %v4008_v28, %v3319_v27 }
  0xb9   :  { %v3575_v54 = vld [vmem:[#allocation9 + $0x6c8] sm:$0xf]  ;;  %v4072_v39 = vld [vmem:[#allocation9 + $0x6d4] sm:$0xf0]  ;;  %v3448_v63 = vor.u32 %v4040_v32, %v3447_v33 }
  0xba   :  { %v3703_v1 = vld [vmem:[#allocation9 + $0x7c8] sm:$0xf]  ;;  %v4104_v2 = vld [vmem:[#allocation9 + $0x7d4] sm:$0xf0]  ;;  %v3576_v35 = vor.u32 %v4072_v39, %v3575_v54 }
  0xbb   :  { %2029 = vmatpush.bf16.msra.mxu3 %v3144_v31  ;;  %1991 = vmatpush.bf16.msra.mxu0 %v2744_v47  ;;  %v3303_v7 = vld [vmem:[#allocation9 + $0x4a8] sm:$0xf]  ;;  %v4004_v31 = vld [vmem:[#allocation9 + $0x4b4] sm:$0xf0]  ;;  %v3704_v6 = vor.u32 %v4104_v2, %v3703_v1 }
  0xbc   :  { %2004 = vmatpush.bf16.msra.mxu1 %v2872_v14  ;;  %2017 = vmatpush.bf16.msra.mxu2 %v3000_v19  ;;  %v3431_v40 = vld [vmem:[#allocation9 + $0x5a8] sm:$0xf]  ;;  %v4036_v47 = vld [vmem:[#allocation9 + $0x5b4] sm:$0xf0]  ;;  %v3304_v18 = vor.u32 %v4004_v31, %v3303_v7 }
  0xbd   :  { %v3559_v15 = vld [vmem:[#allocation9 + $0x6a8] sm:$0xf]  ;;  %v4068_v14 = vld [vmem:[#allocation9 + $0x6b4] sm:$0xf0]  ;;  %v3432_v37 = vor.u32 %v4036_v47, %v3431_v40 }
  0xbe   :  { %v3687_v56 = vld [vmem:[#allocation9 + $0x7a8] sm:$0xf]  ;;  %v4100_v19 = vld [vmem:[#allocation9 + $0x7b4] sm:$0xf0]  ;;  %v3560_v5 = vor.u32 %v4068_v14, %v3559_v15 }
  0xbf   :  { %2030 = vmatpush.bf16.msra.mxu3 %v3128_v41  ;;  %1992 = vmatpush.bf16.msra.mxu0 %v2728_v61  ;;  %v3287_v21 = vld [vmem:[#allocation9 + $0x488] sm:$0xf]  ;;  %v4000_v41 = vld [vmem:[#allocation9 + $0x494] sm:$0xf0]  ;;  %v3688_v61 = vor.u32 %v4100_v19, %v3687_v56 }
  0xc0   :  { %2005 = vmatpush.bf16.msra.mxu1 %v2856_v20  ;;  %2018 = vmatpush.bf16.msra.mxu2 %v2984_v48  ;;  %v3415_v9 = vld [vmem:[#allocation9 + $0x588] sm:$0xf]  ;;  %v4032_v29 = vld [vmem:[#allocation9 + $0x594] sm:$0xf0]  ;;  %v3288_v30 = vor.u32 %v4000_v41, %v3287_v21  ;;  %v2825_v21 = vld [vmem:[#allocation9 + $0xf8] sm:$0xf0] }
  0xc1   :  { %v3543_v62 = vld [vmem:[#allocation9 + $0x688] sm:$0xf]  ;;  %v4064_v12 = vld [vmem:[#allocation9 + $0x694] sm:$0xf0]  ;;  %v3416_v16 = vor.u32 %v4032_v29, %v3415_v9  ;;  %v3914_v9 = vld [vmem:[#allocation9 + $0x1ec] sm:$0xf] }
  0xc2   :  { %v3671_v20 = vld [vmem:[#allocation9 + $0x788] sm:$0xf]  ;;  %v4096_v42 = vld [vmem:[#allocation9 + $0x794] sm:$0xf0]  ;;  %v3544_v55 = vor.u32 %v4064_v12, %v3543_v62  ;;  %v2953_v29 = vld [vmem:[#allocation9 + $0x1f8] sm:$0xf0] }
  0xc3   :  { %2031 = vmatpush.bf16.msra.mxu3 %v3112_v17  ;;  %1993 = vmatpush.bf16.msra.mxu0 %v2712_v50  ;;  %v3271_v25 = vld [vmem:[#allocation9 + $0x468] sm:$0xf]  ;;  %v3996_v48 = vld [vmem:[#allocation9 + $0x474] sm:$0xf0]  ;;  %v3672_v17 = vor.u32 %v4096_v42, %v3671_v20  ;;  %v3946_v12 = vld [vmem:[#allocation9 + $0x2ec] sm:$0xf] }
  0xc4   :  { %2006 = vmatpush.bf16.msra.mxu1 %v2840_v10  ;;  %2019 = vmatpush.bf16.msra.mxu2 %v2968_v52  ;;  %v3399_v38 = vld [vmem:[#allocation9 + $0x568] sm:$0xf]  ;;  %v4028_v44 = vld [vmem:[#allocation9 + $0x574] sm:$0xf0]  ;;  %v3272_v8 = vor.u32 %v3996_v48, %v3271_v25  ;;  %v3209_v25 = vld [vmem:[#allocation9 + $0x3f8] sm:$0xf0] }
  0xc5   :  { %v3527_v46 = vld [vmem:[#allocation9 + $0x668] sm:$0xf]  ;;  %v4060_v43 = vld [vmem:[#allocation9 + $0x674] sm:$0xf0]  ;;  %v3400_v59 = vor.u32 %v4028_v44, %v3399_v38  ;;  %v3878_v38 = vld [vmem:[#allocation9 + $0xcc] sm:$0xf] }
  0xc6   :  { %1994 = vmatmul.bf16.vlgmr.msra.gmra.mxu0 %v4695_v3  ;;  %v3655_v50 = vld [vmem:[#allocation9 + $0x768] sm:$0xf]  ;;  %v4092_v51 = vld [vmem:[#allocation9 + $0x774] sm:$0xf0]  ;;  %v2809_v44 = vld [vmem:[#allocation9 + $0xd8] sm:$0xf0] }
  0xc7   :  { %2038 = vmatpush.bf16.msrb.mxu0 %v3336_v22  ;;  %2032 = vmatpush.bf16.msra.mxu3 %v3096_v57  ;;  %v3255_v4 = vld [vmem:[#allocation9 + $0x448] sm:$0xf]  ;;  %v3992_v10 = vld [vmem:[#allocation9 + $0x454] sm:$0xf0]  ;;  %v3528_v22 = vor.u32 %v4060_v43, %v3527_v46  ;;  %v3656_v52 = vor.u32 %v4092_v51, %v3655_v50  ;;  %v3910_v43 = vld [vmem:[#allocation9 + $0x1cc] sm:$0xf] }
  0xc8   :  { %2051 = vmatpush.bf16.msrb.mxu1 %v3464_v53  ;;  %2064 = vmatpush.bf16.msrb.mxu2 %v3592_v58  ;;  %v3383_v24 = vld [vmem:[#allocation9 + $0x548] sm:$0xf]  ;;  %v4024_v26 = vld [vmem:[#allocation9 + $0x554] sm:$0xf0]  ;;  %v3256_v28 = vor.u32 %v3992_v10, %v3255_v4  ;;  %v3942_v51 = vld [vmem:[#allocation9 + $0x2cc] sm:$0xf]  ;;  %v2812_v4 = vor.u32 %v3878_v38, %v2809_v44 }
  0xc9   :  { %2020 = vmatmul.bf16.vlgmr.msra.gmra.mxu2 %v4638_v11  ;;  %2007 = vmatmul.bf16.vlgmr.msra.gmra.mxu1 %v4702_v0  ;;  %v3511_v53 = vld [vmem:[#allocation9 + $0x648] sm:$0xf]  ;;  %v4056_v27 = vld [vmem:[#allocation9 + $0x654] sm:$0xf0]  ;;  %v3384_v33 = vor.u32 %v4024_v26, %v3383_v24  ;;  %v3974_v10 = vld [vmem:[#allocation9 + $0x3cc] sm:$0xf] }
  0xca   :  { %2033 = vmatmul.bf16.vlgmr.msra.gmra.mxu3 %v4640_v23  ;;  %v3639_v57 = vld [vmem:[#allocation9 + $0x748] sm:$0xf]  ;;  %v4088_v58 = vld [vmem:[#allocation9 + $0x754] sm:$0xf0]  ;;  %v3512_v54 = vor.u32 %v4056_v27, %v3511_v53  ;;  %v3874_v26 = vld [vmem:[#allocation9 + $0xac] sm:$0xf] }
  0xcb   :  { %2077 = vmatpush.bf16.msrb.mxu3 %v3720_v34  ;;  %2039 = vmatpush.bf16.msrb.mxu0 %v3320_v60  ;;  %v3239_v32 = vld [vmem:[#allocation9 + $0x428] sm:$0xf]  ;;  %v3988_v34 = vld [vmem:[#allocation9 + $0x434] sm:$0xf0]  ;;  %v3640_v1 = vor.u32 %v4088_v58, %v3639_v57  ;;  %v3906_v27 = vld [vmem:[#allocation9 + $0x1ac] sm:$0xf] }
  0xcc   :  { %2052 = vmatpush.bf16.msrb.mxu1 %v3448_v63  ;;  %2065 = vmatpush.bf16.msrb.mxu2 %v3576_v35  ;;  %v3367_v39 = vld [vmem:[#allocation9 + $0x528] sm:$0xf]  ;;  %v4020_v60 = vld [vmem:[#allocation9 + $0x534] sm:$0xf0]  ;;  %v3240_v31 = vor.u32 %v3988_v34, %v3239_v32  ;;  %v3938_v58 = vld [vmem:[#allocation9 + $0x2ac] sm:$0xf] }
  0xcd   :  { %v3495_v2 = vld [vmem:[#allocation9 + $0x628] sm:$0xf]  ;;  %v4052_v63 = vld [vmem:[#allocation9 + $0x634] sm:$0xf0] }
  0xce   :  { %v3623_v7 = vld [vmem:[#allocation9 + $0x728] sm:$0xf]  ;;  %v4084_v35 = vld [vmem:[#allocation9 + $0x734] sm:$0xf0]  ;;  %v3496_v56 = vor.u32 %v4052_v63, %v3495_v2  ;;  %v3870_v63 = vld [vmem:[#allocation9 + $0x8c] sm:$0xf] }
  0xcf   :  { %2078 = vmatpush.bf16.msrb.mxu3 %v3704_v6  ;;  %2040 = vmatpush.bf16.msrb.mxu0 %v3304_v18  ;;  %v3223_v40 = vld [vmem:[#allocation9 + $0x408] sm:$0xf]  ;;  %v3984_v47 = vld [vmem:[#allocation9 + $0x414] sm:$0xf0]  ;;  %v3368_v6 = vor.u32 %v4020_v60, %v3367_v39  ;;  %v3624_v41 = vor.u32 %v4084_v35, %v3623_v7  ;;  %v3177_v39 = vld [vmem:[#allocation9 + $0x3b8] sm:$0xf0] }
  0xd0   :  { %2053 = vmatpush.bf16.msrb.mxu1 %v3432_v37  ;;  %2066 = vmatpush.bf16.msrb.mxu2 %v3560_v5  ;;  %v3351_v15 = vld [vmem:[#allocation9 + $0x508] sm:$0xf]  ;;  %v4016_v14 = vld [vmem:[#allocation9 + $0x514] sm:$0xf0]  ;;  %v3882_v37 = vld [vmem:[#allocation9 + $0xec] sm:$0xf] }
  0xd1   :  { %v3479_v18 = vld [vmem:[#allocation9 + $0x608] sm:$0xf]  ;;  %v4048_v19 = vld [vmem:[#allocation9 + $0x614] sm:$0xf0]  ;;  %v3352_v20 = vor.u32 %v4016_v14, %v3351_v15  ;;  %v2828_v42 = vor.u32 %v3882_v37, %v2825_v21  ;;  %v2777_v7 = vld [vmem:[#allocation9 + $0x98] sm:$0xf0] }
  0xd2   :  { %v3607_v5 = vld [vmem:[#allocation9 + $0x708] sm:$0xf]  ;;  %v4080_v62 = vld [vmem:[#allocation9 + $0x714] sm:$0xf0]  ;;  %v3480_v48 = vor.u32 %v4048_v19, %v3479_v18  ;;  %v3934_v15 = vld [vmem:[#allocation9 + $0x28c] sm:$0xf]  ;;  %v2780_v18 = vor.u32 %v3870_v63, %v2777_v7 }
  0xd3   :  { %2079 = vmatpush.bf16.msrb.mxu3 %v3688_v61  ;;  %2041 = vmatpush.bf16.msrb.mxu0 %v3288_v30  ;;  %v3224_v61 = vor.u32 %v3984_v47, %v3223_v40  ;;  %v3081_v30 = vld [vmem:[#allocation9 + $0x2f8] sm:$0xf0]  ;;  %v3902_v40 = vld [vmem:[#allocation9 + $0x18c] sm:$0xf] }
  0xd4   :  { %2054 = vmatpush.bf16.msrb.mxu1 %v3416_v16  ;;  %2067 = vmatpush.bf16.msrb.mxu2 %v3544_v55  ;;  %v3978_v16 = vld [vmem:[#allocation9 + $0x3ec] sm:$0xf]  ;;  %v2956_v55 = vor.u32 %v3914_v9, %v2953_v29  ;;  %v3084_v46 = vor.u32 %v3946_v12, %v3081_v30  ;;  %v2905_v47 = vld [vmem:[#allocation9 + $0x198] sm:$0xf0] }
  0xd5   :  { %v3212_v50 = vor.u32 %v3978_v16, %v3209_v25  ;;  %v3033_v14 = vld [vmem:[#allocation9 + $0x298] sm:$0xf0]  ;;  %v2908_v37 = vor.u32 %v3902_v40, %v2905_v47  ;;  %v3866_v21 = vld [vmem:[#allocation9 + $0x6c] sm:$0xf] }
  0xd6   :  { %v3161_v19 = vld [vmem:[#allocation9 + $0x398] sm:$0xf0]  ;;  %v3898_v9 = vld [vmem:[#allocation9 + $0x16c] sm:$0xf] }
  0xd7   :  { %2080 = vmatpush.bf16.msrb.mxu3 %v3672_v17  ;;  %2042 = vmatpush.bf16.msrb.mxu0 %v3272_v8  ;;  %v3608_v17 = vor.u32 %v4080_v62, %v3607_v5  ;;  %v2937_v8 = vld [vmem:[#allocation9 + $0x1d8] sm:$0xf0]  ;;  %v3036_v5 = vor.u32 %v3934_v15, %v3033_v14  ;;  %v3930_v12 = vld [vmem:[#allocation9 + $0x26c] sm:$0xf] }
  0xd8   :  { %2055 = vmatpush.bf16.msrb.mxu1 %v3400_v59  ;;  %2068 = vmatpush.bf16.msrb.mxu2 %v3528_v22  ;;  %v3065_v59 = vld [vmem:[#allocation9 + $0x2d8] sm:$0xf0]  ;;  %v2940_v24 = vor.u32 %v3910_v43, %v2937_v8  ;;  %v3962_v25 = vld [vmem:[#allocation9 + $0x36c] sm:$0xf] }
  0xd9   :  { %v3193_v22 = vld [vmem:[#allocation9 + $0x3d8] sm:$0xf0]  ;;  %v3068_v53 = vor.u32 %v3942_v51, %v3065_v59  ;;  %v3918_v14 = vld [vmem:[#allocation9 + $0x20c] sm:$0xf] }
  0xda   :  { %v3196_v57 = vor.u32 %v3974_v10, %v3193_v22  ;;  %v2889_v29 = vld [vmem:[#allocation9 + $0x178] sm:$0xf0]  ;;  %v3926_v10 = vld [vmem:[#allocation9 + $0x24c] sm:$0xf] }
  0xdb   :  { %2081 = vmatpush.bf16.msrb.mxu3 %v3656_v52  ;;  %2043 = vmatpush.bf16.msrb.mxu0 %v3256_v28  ;;  %v2793_v52 = vld [vmem:[#allocation9 + $0xb8] sm:$0xf0]  ;;  %v2892_v44 = vor.u32 %v3898_v9, %v2889_v29  ;;  %v3950_v29 = vld [vmem:[#allocation9 + $0x30c] sm:$0xf] }
  0xdc   :  { %2056 = vmatpush.bf16.msrb.mxu1 %v3384_v33  ;;  %2069 = vmatpush.bf16.msrb.mxu2 %v3512_v54  ;;  %v2921_v28 = vld [vmem:[#allocation9 + $0x1b8] sm:$0xf0]  ;;  %v2796_v34 = vor.u32 %v3874_v26, %v2793_v52  ;;  %v3970_v54 = vld [vmem:[#allocation9 + $0x3ac] sm:$0xf] }
  0xdd   :  { %v3049_v33 = vld [vmem:[#allocation9 + $0x2b8] sm:$0xf0]  ;;  %v2924_v2 = vor.u32 %v3906_v27, %v2921_v28  ;;  %v3958_v26 = vld [vmem:[#allocation9 + $0x34c] sm:$0xf] }
  0xde   :  { %v3052_v35 = vor.u32 %v3938_v58, %v3049_v33  ;;  %v3017_v30 = vld [vmem:[#allocation9 + $0x278] sm:$0xf0]  ;;  %v3858_v28 = vld [vmem:[#allocation9 + $0x2c] sm:$0xf] }
  0xdf   :  { %2082 = vmatpush.bf16.msrb.mxu3 %v3640_v1  ;;  %2044 = vmatpush.bf16.msrb.mxu0 %v3240_v31  ;;  %v3020_v8 = vor.u32 %v3930_v12, %v3017_v30  ;;  %v2873_v51 = vld [vmem:[#allocation9 + $0x158] sm:$0xf0]  ;;  %v3890_v33 = vld [vmem:[#allocation9 + $0x12c] sm:$0xf] }
  0xe0   :  { %2057 = vmatpush.bf16.msrb.mxu1 %v3368_v6  ;;  %2070 = vmatpush.bf16.msrb.mxu2 %v3496_v56  ;;  %v3180_v6 = vor.u32 %v3970_v54, %v3177_v39  ;;  %v3966_v56 = vld [vmem:[#allocation9 + $0x38c] sm:$0xf]  ;;  %v3001_v22 = vld [vmem:[#allocation9 + $0x258] sm:$0xf0] }
  0xe1   :  { %v3164_v62 = vor.u32 %v3966_v56, %v3161_v19  ;;  %v3129_v52 = vld [vmem:[#allocation9 + $0x358] sm:$0xf0]  ;;  %v3004_v58 = vor.u32 %v3926_v10, %v3001_v22  ;;  %v4010_v19 = vld [vmem:[#allocation9 + $0x4ec] sm:$0xf] }
  0xe2   :  { %v3132_v39 = vor.u32 %v3958_v26, %v3129_v52  ;;  %v2713_v40 = vld [vmem:[#allocation9 + $0x18] sm:$0xf0]  ;;  %v4070_v26 = vld [vmem:[#allocation9 + $0x6cc] sm:$0xf] }
  0xe3   :  { %2083 = vmatpush.bf16.msrb.mxu3 %v3624_v41  ;;  %2045 = vmatpush.bf16.msrb.mxu0 %v3224_v61  ;;  %v1787_v32 = vpop.f32.mrf.mxu0  ;;  %v1800_v60 = vpop.f32.mrf.mxu1  ;;  %v2761_v41 = vld [vmem:[#allocation9 + $0x78] sm:$0xf0] }
  0xe4   :  { %2058 = vmatpush.bf16.msrb.mxu1 %v3352_v20  ;;  %2071 = vmatpush.bf16.msrb.mxu2 %v3480_v48  ;;  %v4791_v31 = vpop.f32.mrf.mxu3  ;;  %v1801_v61 = vadd.f32 %v1800_v60, %v1787_v32  ;;  %v4330_v20 = vmov 8.0   ;;  %v2764_v16 = vor.u32 %v3866_v21, %v2761_v41  ;;  %v3145_v48 = vld [vmem:[#allocation9 + $0x378] sm:$0xf0] }
  0xe5   :  { %v1813_v1 = vpop.f32.mrf.mxu2  ;;  %4154 = vrcp.f32 %v4330_v20  ;;  %v2857_v32 = vld [vmem:[#allocation9 + $0x138] sm:$0xf0] }
  0xe6   :  { %2046 = vmatmul.bf16.vlgmr.msrb.gmra.mxu0 %v4770_v13  ;;  %v1814_v59 = vadd.f32 %v1813_v1, %v1801_v61  ;;  %v2985_v60 = vld [vmem:[#allocation9 + $0x238] sm:$0xf0]  ;;  %v3954_v1 = vld [vmem:[#allocation9 + $0x32c] sm:$0xf]  ;;  %v2860_v47 = vor.u32 %v3890_v33, %v2857_v32 }
  0xe7   :  { %2090 = vmatpush.bf16.msra.mxu0 %v2828_v42  ;;  %2084 = vmatpush.bf16.msrb.mxu3 %v3608_v17  ;;  %v3862_v17 = vld [vmem:[#allocation9 + $0x4c] sm:$0xf]  ;;  %v2841_v15 = vld [vmem:[#allocation9 + $0x118] sm:$0xf0] }
  0xe8   :  { %2103 = vmatpush.bf16.msra.mxu1 %v2956_v55  ;;  %2116 = vmatpush.bf16.msra.mxu2 %v3084_v46  ;;  %v2745_v46 = vld [vmem:[#allocation9 + $0x58] sm:$0xf0]  ;;  %v1827_v54 = vadd.f32 %v4791_v31, %v1814_v59  ;;  %v4042_v61 = vld [vmem:[#allocation9 + $0x5ec] sm:$0xf] }
  0xe9   :  { %2072 = vmatmul.bf16.vlgmr.msrb.gmra.mxu2 %v4764_v45  ;;  %2059 = vmatmul.bf16.vlgmr.msrb.gmra.mxu1 %v4772_v49  ;;  %v2969_v56 = vld [vmem:[#allocation9 + $0x218] sm:$0xf0]  ;;  %v4002_v32 = vld [vmem:[#allocation9 + $0x4ac] sm:$0xf] }
  0xea   :  { %2085 = vmatmul.bf16.vlgmr.msrb.gmra.mxu3 %v4766_v36  ;;  %v3097_v20 = vld [vmem:[#allocation9 + $0x318] sm:$0xf0] }
  0xeb   :  { %2129 = vmatpush.bf16.msra.mxu3 %v3212_v50  ;;  %2091 = vmatpush.bf16.msra.mxu0 %v2812_v4  ;;  %v1789_v42 = vpop.f32.mrf.mxu0  ;;  %v1802_v55 = vpop.f32.mrf.mxu1  ;;  %v3894_v50 = vld [vmem:[#allocation9 + $0x14c] sm:$0xf]  ;;  %v3148_v4 = vor.u32 %v3962_v25, %v3145_v48  ;;  %v3449_v10 = vld [vmem:[#allocation9 + $0x5d8] sm:$0xf0] }
  0xec   :  { %2104 = vmatpush.bf16.msra.mxu1 %v2940_v24  ;;  %2117 = vmatpush.bf16.msra.mxu2 %v3068_v53  ;;  %v1828_v43 = vpop.f32.mrf.mxu3  ;;  %v2748_v24 = vor.u32 %v3862_v17, %v2745_v46  ;;  %v4794_v53 = vpop.eup %4154  ;;  %v2876_v27 = vor.u32 %v3894_v50, %v2873_v51  ;;  %v4074_v42 = vld [vmem:[#allocation9 + $0x6ec] sm:$0xf]  ;;  %v2972_v17 = vor.u32 %v3918_v14, %v2969_v56  ;;  %v3577_v52 = vld [vmem:[#allocation9 + $0x6d8] sm:$0xf0] }
  0xed   :  { %v1815_v38 = vpop.f32.mrf.mxu2  ;;  %v4798_v63 = vmul.f32 8.0, %v4794_v53  ;;  %v4006_v43 = vld [vmem:[#allocation9 + $0x4cc] sm:$0xf]  ;;  %v3100_v51 = vor.u32 %v3950_v29, %v3097_v20  ;;  %v3689_v56 = vld [vmem:[#allocation9 + $0x7b8] sm:$0xf0]  ;;  %vm2223_vm0 = vweird.f32 %v4794_v53 }
  0xee   :  { %v4106_v38 = vld [vmem:[#allocation9 + $0x7ec] sm:$0xf]  ;;  %v3673_v20 = vld [vmem:[#allocation9 + $0x798] sm:$0xf0] }
  0xef   :  { %2130 = vmatpush.bf16.msra.mxu3 %v3196_v57  ;;  %2092 = vmatpush.bf16.msra.mxu0 %v2796_v34  ;;  %v2729_v57 = vld [vmem:[#allocation9 + $0x38] sm:$0xf0]  ;;  %v3922_v34 = vld [vmem:[#allocation9 + $0x22c] sm:$0xf]  ;;  %v2220_v22 = vsub.f32 1.0, %v4798_v63 }
  0xf0   :  { %2105 = vmatpush.bf16.msra.mxu1 %v2924_v2  ;;  %2118 = vmatpush.bf16.msra.mxu2 %v3052_v35  ;;  %v3113_v2 = vld [vmem:[#allocation9 + $0x338] sm:$0xf0]  ;;  %v2732_v7 = vor.u32 %v3858_v28, %v2729_v57  ;;  %v3854_v35 = vld [vmem:[#allocation9 + $0xc] sm:$0xf]  ;;  %v2988_v31 = vor.u32 %v3922_v34, %v2985_v60  ;;  %v3580_v60 = vor.u32 %v4070_v26, %v3577_v52 }
  0xf1   :  { %v3116_v9 = vor.u32 %v3954_v1, %v3113_v2  ;;  %v2716_v30 = vor.u32 %v3854_v35, %v2713_v40  ;;  %v4102_v57 = vld [vmem:[#allocation9 + $0x7cc] sm:$0xf]  ;;  %v3305_v34 = vld [vmem:[#allocation9 + $0x4b8] sm:$0xf0]  ;;  %v2221_v35 = vmul.f32 %v4794_v53, %v2220_v22 }
  0xf2   :  { %v4034_v1 = vld [vmem:[#allocation9 + $0x5ac] sm:$0xf]  ;;  %v3433_v2 = vld [vmem:[#allocation9 + $0x5b8] sm:$0xf0] }
  0xf3   :  { %2131 = vmatpush.bf16.msra.mxu3 %v3180_v6  ;;  %2093 = vmatpush.bf16.msra.mxu0 %v2780_v18  ;;  %v3886_v6 = vld [vmem:[#allocation9 + $0x10c] sm:$0xf]  ;;  %v1839_v18 = vpop.f32.mrf.mxu0  ;;  %v1852_v41 = vpop.f32.mrf.mxu1  ;;  %v2222_v29 = vadd.f32 %v4794_v53, %v2221_v35  ;;  %v3257_v22 = vld [vmem:[#allocation9 + $0x458] sm:$0xf0] }
  0xf4   :  { %2106 = vmatpush.bf16.msra.mxu1 %v2908_v37  ;;  %2119 = vmatpush.bf16.msra.mxu2 %v3036_v5  ;;  %v3337_v37 = vld [vmem:[#allocation9 + $0x4f8] sm:$0xf0]  ;;  %v1840_v21 = vadd.f32 %v1839_v18, %v1827_v54  ;;  %v1878_v12 = vpop.f32.mrf.mxu3  ;;  %v2844_v48 = vor.u32 %v3886_v6, %v2841_v15  ;;  %v3308_v18 = vor.u32 %v4002_v32, %v3305_v34  ;;  %v4022_v52 = vld [vmem:[#allocation9 + $0x54c] sm:$0xf] }
  0xf5   :  { %v1865_v5 = vpop.f32.mrf.mxu2  ;;  %v3340_v55 = vor.u32 %v4010_v19, %v3337_v37  ;;  %v3561_v6 = vld [vmem:[#allocation9 + $0x6b8] sm:$0xf0]  ;;  %v3436_v19 = vor.u32 %v4034_v1, %v3433_v2  ;;  %v3998_v37 = vld [vmem:[#allocation9 + $0x48c] sm:$0xf] }
  0xf6   :  { %v1853_v25 = vadd.f32 %v1852_v41, %v1840_v21  ;;  %v3289_v21 = vld [vmem:[#allocation9 + $0x498] sm:$0xf0]  ;;  %v3986_v2 = vld [vmem:[#allocation9 + $0x42c] sm:$0xf] }
  0xf7   :  { %2132 = vmatpush.bf16.msra.mxu3 %v3164_v62  ;;  %2094 = vmatpush.bf16.msra.mxu0 %v2764_v16  ;;  %v3465_v62 = vld [vmem:[#allocation9 + $0x5f8] sm:$0xf0] }
  0xf8   :  { %2107 = vmatpush.bf16.msra.mxu1 %v2892_v44  ;;  %2120 = vmatpush.bf16.msra.mxu2 %v3020_v8  ;;  %v3593_v16 = vld [vmem:[#allocation9 + $0x6f8] sm:$0xf0]  ;;  %v3468_v46 = vor.u32 %v4042_v61, %v3465_v62  ;;  %v1866_v50 = vadd.f32 %v1865_v5, %v1853_v25  ;;  %v4062_v61 = vld [vmem:[#allocation9 + $0x68c] sm:$0xf] }
  0xf9   :  { %v3721_v44 = vld [vmem:[#allocation9 + $0x7f8] sm:$0xf0]  ;;  %v3596_v59 = vor.u32 %v4074_v42, %v3593_v16  ;;  %v3994_v16 = vld [vmem:[#allocation9 + $0x46c] sm:$0xf] }
  0xfa   :  { %v3321_v8 = vld [vmem:[#allocation9 + $0x4d8] sm:$0xf0] }
  0xfb   :  { %2133 = vmatpush.bf16.msra.mxu3 %v3148_v4  ;;  %2095 = vmatpush.bf16.msra.mxu0 %v2748_v24  ;;  %v4038_v4 = vld [vmem:[#allocation9 + $0x5cc] sm:$0xf]  ;;  %v3724_v24 = vor.u32 %v4106_v38, %v3721_v44  ;;  %v3324_v28 = vor.u32 %v4006_v43, %v3321_v8  ;;  %v1841_v54 = vpop.f32.mrf.mxu0  ;;  %v1854_v63 = vpop.f32.mrf.mxu1  ;;  %v3545_v62 = vld [vmem:[#allocation9 + $0x698] sm:$0xf0]  ;;  %v4813_v44 = vsel %vm2223_vm0, %v4794_v53, %v2222_v29 }
  0xfc   :  { %2108 = vmatpush.bf16.msra.mxu1 %v2876_v27  ;;  %2121 = vmatpush.bf16.msra.mxu2 %v3004_v58  ;;  %v4801_v27 = vadd.f32 %v1878_v12, %v1866_v50  ;;  %v3705_v58 = vld [vmem:[#allocation9 + $0x7d8] sm:$0xf0]  ;;  %v3452_v33 = vor.u32 %v4038_v4, %v3449_v10  ;;  %v1880_v15 = vpop.f32.mrf.mxu3  ;;  %v3990_v10 = vld [vmem:[#allocation9 + $0x44c] sm:$0xf] }
  0xfd   :  { %v3708_v40 = vor.u32 %v4102_v57, %v3705_v58  ;;  %v3273_v25 = vld [vmem:[#allocation9 + $0x478] sm:$0xf0]  ;;  %v4054_v58 = vld [vmem:[#allocation9 + $0x64c] sm:$0xf]  ;;  %v3260_v54 = vor.u32 %v3990_v10, %v3257_v22 }
  0xfe   :  { %v3401_v38 = vld [vmem:[#allocation9 + $0x578] sm:$0xf0]  ;;  %v3276_v50 = vor.u32 %v3994_v16, %v3273_v25  ;;  %v4050_v15 = vld [vmem:[#allocation9 + $0x62c] sm:$0xf] }
  0xff   :  { %2134 = vmatpush.bf16.msra.mxu3 %v3132_v39  ;;  %2096 = vmatpush.bf16.msra.mxu0 %v2732_v7  ;;  %v2194_v39 = vrot.slane %v4801_v27, 4  ;;  %v1867_v7 = vpop.f32.mrf.mxu2  ;;  %v3529_v43 = vld [vmem:[#allocation9 + $0x678] sm:$0xf0]  ;;  %v4078_v16 = vld [vmem:[#allocation9 + $0x70c] sm:$0xf] }
 0x100   :  { %2109 = vmatpush.bf16.msra.mxu1 %v2860_v47  ;;  %2122 = vmatpush.bf16.msra.mxu2 %v2988_v31  ;;  %v4066_v47 = vld [vmem:[#allocation9 + $0x6ac] sm:$0xf]  ;;  %v3241_v63 = vld [vmem:[#allocation9 + $0x438] sm:$0xf0] }
 0x101   :  { %v2195_v14 = vadd.f32 %v2194_v39, %v4801_v27  ;;  %v4098_v31 = vld [vmem:[#allocation9 + $0x7ac] sm:$0xf]  ;;  %v3564_v5 = vor.u32 %v4066_v47, %v3561_v6  ;;  %v3369_v47 = vld [vmem:[#allocation9 + $0x538] sm:$0xf0] }
 0x102   :  { %v4086_v39 = vld [vmem:[#allocation9 + $0x74c] sm:$0xf]  ;;  %v3609_v25 = vld [vmem:[#allocation9 + $0x718] sm:$0xf0] }
 0x103   :  { %2135 = vmatpush.bf16.msra.mxu3 %v3116_v9  ;;  %2097 = vmatpush.bf16.msra.mxu0 %v2716_v30  ;;  %v2196_v41 = vrot.slane %v2195_v14, 2  ;;  %v3417_v9 = vld [vmem:[#allocation9 + $0x598] sm:$0xf0]  ;;  %v4094_v30 = vld [vmem:[#allocation9 + $0x78c] sm:$0xf] }
 0x104   :  { %2110 = vmatpush.bf16.msra.mxu1 %v2844_v48  ;;  %2123 = vmatpush.bf16.msra.mxu2 %v2972_v17  ;;  %v3548_v48 = vor.u32 %v4062_v61, %v3545_v62  ;;  %v3676_v17 = vor.u32 %v4094_v30, %v3673_v20  ;;  %v3353_v61 = vld [vmem:[#allocation9 + $0x518] sm:$0xf0]  ;;  %v4114_v10 = vld [vmem:[#allocation12 + $0x28] sm:$0xff] }
 0x105   :  { %v2197_v12 = vadd.f32 %v2196_v41, %v2195_v14  ;;  %v3982_v41 = vld [vmem:[#allocation9 + $0x40c] sm:$0xf] }
 0x106   :  { %2098 = vmatmul.bf16.vlgmr.msra.gmra.mxu0 %v4695_v3  ;;  %v4030_v3 = vld [vmem:[#allocation9 + $0x58c] sm:$0xf]  ;;  %v1904_v32 = vpop.f32.mrf.mxu1 }
 0x107   :  { %2142 = vmatpush.bf16.msrb.mxu0 %v3340_v55  ;;  %2136 = vmatpush.bf16.msra.mxu3 %v3100_v51  ;;  %v3420_v42 = vor.u32 %v4030_v3, %v3417_v9  ;;  %v4026_v55 = vld [vmem:[#allocation9 + $0x56c] sm:$0xf] }
 0x108   :  { %2155 = vmatpush.bf16.msrb.mxu1 %v3468_v46  ;;  %2168 = vmatpush.bf16.msrb.mxu2 %v3596_v59  ;;  %v4058_v46 = vld [vmem:[#allocation9 + $0x66c] sm:$0xf]  ;;  %v3657_v59 = vld [vmem:[#allocation9 + $0x778] sm:$0xf0]  ;;  %v3404_v4 = vor.u32 %v4026_v55, %v3401_v38 }
 0x109   :  { %2124 = vmatmul.bf16.vlgmr.msra.gmra.mxu2 %v4638_v11  ;;  %2111 = vmatmul.bf16.vlgmr.msra.gmra.mxu1 %v4702_v0  ;;  %v3692_v11 = vor.u32 %v4098_v31, %v3689_v56  ;;  %v2198_v0 = vrot.slane %v2197_v12, 1  ;;  %v4090_v51 = vld [vmem:[#allocation9 + $0x76c] sm:$0xf]  ;;  %v3532_v53 = vor.u32 %v4058_v46, %v3529_v43  ;;  %v3244_v31 = vor.u32 %v3986_v2, %v3241_v63 }
 0x10a   :  { %2137 = vmatmul.bf16.vlgmr.msra.gmra.mxu3 %v4640_v23  ;;  %v3292_v23 = vor.u32 %v3998_v37, %v3289_v21  ;;  %v3660_v57 = vor.u32 %v4090_v51, %v3657_v59  ;;  %v4082_v56 = vld [vmem:[#allocation9 + $0x72c] sm:$0xf] }
 0x10b   :  { %2181 = vmatpush.bf16.msrb.mxu3 %v3724_v24  ;;  %2143 = vmatpush.bf16.msrb.mxu0 %v3324_v28  ;;  %v2199_v8 = vadd.f32 %v2198_v0, %v2197_v12  ;;  %v4815_v24 = vpop.f32.mrf.mxu0  ;;  %v3385_v28 = vld [vmem:[#allocation9 + $0x558] sm:$0xf0]  ;;  %v4046_v12 = vld [vmem:[#allocation9 + $0x60c] sm:$0xf] }
 0x10c   :  { %2156 = vmatpush.bf16.msrb.mxu1 %v3452_v33  ;;  %2169 = vmatpush.bf16.msrb.mxu2 %v3580_v60  ;;  %v3513_v33 = vld [vmem:[#allocation9 + $0x658] sm:$0xf0]  ;;  %v3388_v1 = vor.u32 %v4022_v52, %v3385_v28  ;;  %v1917_v14 = vpop.f32.mrf.mxu2  ;;  %v1905_v59 = vadd.f32 %v1904_v32, %v4815_v24  ;;  %v4110_v63 = vld [vmem:[#allocation12 + $0x8] sm:$0xff] }
 0x10d   :  { %v2225_v26 = vmul.f32 %v4813_v44, %v2199_v8  ;;  %v3641_v60 = vld [vmem:[#allocation9 + $0x758] sm:$0xf0]  ;;  %v3516_v35 = vor.u32 %v4054_v58, %v3513_v33  ;;  %v1930_v37 = vpop.f32.mrf.mxu3 }
 0x10e   :  { %v3644_v6 = vor.u32 %v4086_v39, %v3641_v60  ;;  %v1906_v30 = vpop.f32.mrf.mxu1  ;;  %v4112_v28 = vld [vmem:[#allocation12 + $0x18] sm:$0xff] }
 0x10f   :  { %2182 = vmatpush.bf16.msrb.mxu3 %v3708_v40  ;;  %2144 = vmatpush.bf16.msrb.mxu0 %v3308_v18  ;;  %v4819_v34 = vsub.f32 %v4801_v27, %v2225_v26  ;;  %v4018_v40 = vld [vmem:[#allocation9 + $0x52c] sm:$0xf]  ;;  %v3497_v27 = vld [vmem:[#allocation9 + $0x638] sm:$0xf0]  ;;  %v1918_v26 = vadd.f32 %v1917_v14, %v1905_v59 }
 0x110   :  { %2157 = vmatpush.bf16.msrb.mxu1 %v3436_v19  ;;  %2170 = vmatpush.bf16.msrb.mxu2 %v3564_v5  ;;  %v3625_v19 = vld [vmem:[#allocation9 + $0x738] sm:$0xf0]  ;;  %v3372_v21 = vor.u32 %v4018_v40, %v3369_v47  ;;  %v3500_v29 = vor.u32 %v4050_v15, %v3497_v27  ;;  %v4834_v47 = vld [vmem:[%s4862_s5] sm:$0xf]  ;;  %v4122_v30 = vld [vmem:[#allocation12 + $0x68] sm:$0xff] }
 0x111   :  { %v2233_v7 = vmul.f32 %v4819_v34, %v4819_v34  ;;  %v3225_v5 = vld [vmem:[#allocation9 + $0x418] sm:$0xf0]  ;;  %v3628_v62 = vor.u32 %v4082_v56, %v3625_v19  ;;  %v1931_v24 = vadd.f32 %v1930_v37, %v1918_v26  ;;  %v2329_v56 = vperm.slane %v4834_v47, 0 }
 0x113   :  { %2183 = vmatpush.bf16.msrb.mxu3 %v3692_v11  ;;  %2145 = vmatpush.bf16.msrb.mxu0 %v3292_v23  ;;  %v2237_v18 = vrot.slane %v2233_v7, 4  ;;  %v1893_v3 = vpop.f32.mrf.mxu0  ;;  %v4014_v11 = vld [vmem:[#allocation9 + $0x50c] sm:$0xf]  ;;  %v3481_v23 = vld [vmem:[#allocation9 + $0x618] sm:$0xf0] }
 0x114   :  { %2158 = vmatpush.bf16.msrb.mxu1 %v3420_v42  ;;  %2171 = vmatpush.bf16.msrb.mxu2 %v3548_v48  ;;  %v3228_v42 = vor.u32 %v3982_v41, %v3225_v5  ;;  %v3356_v0 = vor.u32 %v4014_v11, %v3353_v61  ;;  %v4116_v48 = vld [vmem:[#allocation12 + $0x38] sm:$0xff]  ;;  %v3484_v38 = vor.u32 %v4046_v12, %v3481_v23  ;;  %v1919_v46 = vpop.f32.mrf.mxu2 }
 0x115   :  { %v2238_v9 = vadd.f32 %v2237_v18, %v2233_v7  ;;  %v1932_v8 = vpop.f32.mrf.mxu3  ;;  %v4109_v18 = vld [vmem:[#allocation12] sm:$0xff]  ;;  %v4124_v3 = vld [vmem:[#allocation12 + $0x78] sm:$0xff]  ;;  %v4119_v46 = vld [vmem:[#allocation12 + $0x50] sm:$0xff] }
 0x117   :  { %2184 = vmatpush.bf16.msrb.mxu3 %v3676_v17  ;;  %2146 = vmatpush.bf16.msrb.mxu0 %v3276_v50  ;;  %v2239_v20 = vrot.slane %v2238_v9, 2  ;;  %v3612_v17 = vor.u32 %v4078_v16, %v3609_v25  ;;  %v4115_v50 = vld [vmem:[#allocation12 + $0x30] sm:$0xff]  ;;  %v4121_v16 = vld [vmem:[#allocation12 + $0x60] sm:$0xff] }
 0x118   :  { %2159 = vmatpush.bf16.msrb.mxu1 %v3404_v4  ;;  %2172 = vmatpush.bf16.msrb.mxu2 %v3532_v53  ;;  %v4113_v53 = vld [vmem:[#allocation12 + $0x20] sm:$0xff] }
 0x119   :  { %v2240_v55 = vadd.f32 %v2239_v20, %v2238_v9 }
 0x11b   :  { %2185 = vmatpush.bf16.msrb.mxu3 %v3660_v57  ;;  %2147 = vmatpush.bf16.msrb.mxu0 %v3260_v54  ;;  %v2241_v43 = vrot.slane %v2240_v55, 1 }
 0x11c   :  { %2160 = vmatpush.bf16.msrb.mxu1 %v3388_v1  ;;  %2173 = vmatpush.bf16.msrb.mxu2 %v3516_v35 }
 0x11d   :  { %v2242_v51 = vadd.f32 %v2241_v43, %v2240_v55 }
 0x11f   :  { %2186 = vmatpush.bf16.msrb.mxu3 %v3644_v6  ;;  %2148 = vmatpush.bf16.msrb.mxu0 %v3244_v31  ;;  %v2261_v4 = vmul.f32 %v2242_v51, %v4813_v44 }
 0x120   :  { %2161 = vmatpush.bf16.msrb.mxu1 %v3372_v21  ;;  %2174 = vmatpush.bf16.msrb.mxu2 %v3500_v29 }
 0x121   :  { %v2265_v22 = vadd.f32 1e-05, %v2261_v4 }
 0x123   :  { %2187 = vmatpush.bf16.msrb.mxu3 %v3628_v62  ;;  %2149 = vmatpush.bf16.msrb.mxu0 %v3228_v42  ;;  %4156 = vrsqrt.f32 %v2265_v22  ;;  %v1943_v52 = vpop.f32.mrf.mxu0  ;;  %vm2275_vm2 = vweird.f32 %v2265_v22  ;;  %v4123_v62 = vld [vmem:[#allocation12 + $0x70] sm:$0xff] }
 0x124   :  { %2162 = vmatpush.bf16.msrb.mxu1 %v3356_v0  ;;  %2175 = vmatpush.bf16.msrb.mxu2 %v3484_v38  ;;  %v1944_v57 = vadd.f32 %v1943_v52, %v1931_v24  ;;  %v4120_v38 = vld [vmem:[#allocation12 + $0x58] sm:$0xff]  ;;  %v4117_v52 = vld [vmem:[#allocation12 + $0x40] sm:$0xff] }
 0x126   :  { %2150 = vmatmul.bf16.vlgmr.msrb.gmra.mxu0 %v4770_v13  ;;  %v1956_v33 = vpop.f32.mrf.mxu1 }
 0x127   :  { %2609 = vmatpush.bf16.msra.mxu0 %v4116_v48  ;;  %2188 = vmatpush.bf16.msrb.mxu3 %v3612_v17  ;;  %v1957_v32 = vadd.f32 %v1956_v33, %v1944_v57 }
 0x128   :  { %2163 = vmatmul.bf16.vlgmr.msrb.gmra.mxu1 %v4772_v49  ;;  %2176 = vmatmul.bf16.vlgmr.msrb.gmra.mxu2 %v4764_v45  ;;  %v4111_v45 = vld [vmem:[#allocation12 + $0x10] sm:$0xff] }
 0x129   :  { %v4157_v13 = vpop.eup %4156  ;;  %2622 = vmatpush.bf16.msra.mxu1 %v4124_v3 }
 0x12a   :  { %2189 = vmatmul.bf16.vlgmr.msrb.gmra.mxu3 %v4766_v36  ;;  %v2270_v58 = vmul.f32 %v4157_v13, %v2265_v22  ;;  %vm2276_vm1 = vweird.f32 %v4157_v13  ;;  %v4829_v36 = vld [vmem:[#allocation11] sm:$0xf]  ;;  %v4118_v22 = vld [vmem:[#allocation12 + $0x48] sm:$0xff] }
 0x12b   :  { %2610 = vmatpush.bf16.msra.mxu0 %v4115_v50  ;;  %v1945_v7 = vpop.f32.mrf.mxu0  ;;  %vm2277_vm3 = vmor %vm2275_vm2, %vm2276_vm1  ;;  %v2315_v6 = vperm.slane %v4829_v36, 0 }
 0x12c   :  { %v2271_v49 = vmul.f32 %v4157_v13, %v2270_v58  ;;  %v1969_v39 = vpop.f32.mrf.mxu2 }
 0x12d   :  { %v1970_v1 = vadd.f32 %v1969_v39, %v1957_v32  ;;  %v1982_v2 = vpop.f32.mrf.mxu3  ;;  %2623 = vmatpush.bf16.msra.mxu1 %v4123_v62 }
 0x12e   :  { %v2272_v54 = vmul.f32 0.5, %v2271_v49  ;;  %v1958_v15 = vpop.f32.mrf.mxu1 }
 0x12f   :  { %2611 = vmatpush.bf16.msra.mxu0 %v4114_v10  ;;  %v1983_v40 = vadd.f32 %v1982_v2, %v1970_v1 }
 0x130   :  { %v2273_v60 = vsub.f32 1.5, %v2272_v54 }
 0x131   :  { %v2200_v14 = vrot.slane %v1983_v40, 4  ;;  %2624 = vmatpush.bf16.msra.mxu1 %v4122_v30 }
 0x132   :  { %v2274_v35 = vmul.f32 %v4157_v13, %v2273_v60 }
 0x133   :  { %2612 = vmatpush.bf16.msra.mxu0 %v4113_v53  ;;  %v2201_v19 = vadd.f32 %v2200_v14, %v1983_v40 }
 0x134   :  { %v2278_v27 = vsel %vm2277_vm3, %v4157_v13, %v2274_v35  ;;  %v1971_v21 = vpop.f32.mrf.mxu2 }
 0x135   :  { %v2309_v31 = vmul.f32 %v2278_v27, %v4819_v34  ;;  %v2202_v41 = vrot.slane %v2201_v19, 2  ;;  %v1984_v5 = vpop.f32.mrf.mxu3  ;;  %2625 = vmatpush.bf16.msra.mxu1 %v4121_v16 }
 0x137   :  { %2613 = vmatpush.bf16.msra.mxu0 %v4112_v28  ;;  %v2323_v37 = vmul.f32 %v2315_v6, %v2309_v31  ;;  %v2203_v29 = vadd.f32 %v2202_v41, %v2201_v19  ;;  %v2330_v6 = vperm.slane %v4834_v47, 1 }
 0x139   :  { %v2337_v9 = vadd.f32 %v2329_v56, %v2323_v37  ;;  %v2204_v61 = vrot.slane %v2203_v29, 1  ;;  %2626 = vmatpush.bf16.msra.mxu1 %v4120_v38 }
 0x13b   :  { %2614 = vmatpush.bf16.msra.mxu0 %v4111_v45  ;;  %v2341_v11 = vmax.f32 %v2337_v9, 0.0  ;;  %v2205_v23 = vadd.f32 %v2204_v61, %v2203_v29  ;;  %v4132_v61 = vld [vmem:[#allocation12 + $0xb8] sm:$0xff] }
 0x13c   :  { %2635 = vmatpush.bf16.msra.mxu2 %v4132_v61 }
 0x13d   :  { %v2345_v12 = vpack.c.bf16 %v2341_v11, %v2341_v11  ;;  %v2226_v34 = vmul.f32 %v4813_v44, %v2205_v23  ;;  %2627 = vmatpush.bf16.msra.mxu1 %v4119_v46  ;;  %v4131_v23 = vld [vmem:[#allocation12 + $0xb0] sm:$0xff] }
 0x13f   :  { %2615 = vmatpush.bf16.msra.mxu0 %v4110_v63  ;;  %v2230_v20 = vsub.f32 %v1983_v40, %v2226_v34  ;;  %v2316_v63 = vperm.slane %v4829_v36, 1 }
 0x140   :  { %2636 = vmatpush.bf16.msra.mxu2 %v4131_v23 }
 0x141   :  { %v2234_v42 = vmul.f32 %v2230_v20, %v2230_v20  ;;  %2628 = vmatpush.bf16.msra.mxu1 %v4118_v22 }
 0x143   :  { %2616 = vmatpush.bf16.msra.mxu0 %v4109_v18  ;;  %v1995_v25 = vpop.f32.mrf.mxu0  ;;  %v2243_v0 = vrot.slane %v2234_v42, 4 }
 0x145   :  { %v2244_v48 = vadd.f32 %v2243_v0, %v2234_v42  ;;  %2629 = vmatpush.bf16.msra.mxu1 %v4117_v52 }
 0x146   :  { %2617 = vmatmul.bf16.vlgmr.msra.gmra.mxu0 %v2345_v12  ;;  %v2008_v55 = vpop.f32.mrf.mxu1 }
 0x147   :  { %v2245_v17 = vrot.slane %v2244_v48, 2  ;;  %v2009_v13 = vadd.f32 %v2008_v55, %v1995_v25  ;;  %v4129_v25 = vld [vmem:[#allocation12 + $0xa0] sm:$0xff] }
 0x149   :  { %v2246_v43 = vadd.f32 %v2245_v17, %v2244_v48  ;;  %v4128_v17 = vld [vmem:[#allocation12 + $0x98] sm:$0xff] }
 0x14b   :  { %v1997_v51 = vpop.f32.mrf.mxu0  ;;  %v2247_v59 = vrot.slane %v2246_v43, 1 }
 0x14c   :  { %v2021_v8 = vpop.f32.mrf.mxu2 }
 0x14d   :  { %v2034_v50 = vpop.f32.mrf.mxu3  ;;  %v2248_v4 = vadd.f32 %v2247_v59, %v2246_v43  ;;  %v2022_v57 = vadd.f32 %v2021_v8, %v2009_v13  ;;  %v4127_v43 = vld [vmem:[#allocation12 + $0x90] sm:$0xff] }
 0x14e   :  { %v2010_v10 = vpop.f32.mrf.mxu1 }
 0x14f   :  { %v2262_v26 = vmul.f32 %v2248_v4, %v4813_v44  ;;  %v2035_v32 = vadd.f32 %v2034_v50, %v2022_v57 }
 0x151   :  { %v2266_v53 = vadd.f32 1e-05, %v2262_v26  ;;  %v4126_v26 = vld [vmem:[#allocation12 + $0x88] sm:$0xff] }
 0x153   :  { %4158 = vrsqrt.f32 %v2266_v53  ;;  %vm2285_vm5 = vweird.f32 %v2266_v53 }
 0x154   :  { %v2023_v24 = vpop.f32.mrf.mxu2 }
 0x155   :  { %v2036_v28 = vpop.f32.mrf.mxu3 }
 0x156   :  { %v4125_v28 = vld [vmem:[#allocation12 + $0x80] sm:$0xff] }
 0x159   :  { %v4159_v58 = vpop.eup %4158 }
 0x15a   :  { %v2280_v33 = vmul.f32 %v4159_v58, %v2266_v53  ;;  %vm2286_vm4 = vweird.f32 %v4159_v58 }
 0x15b   :  { %vm2287_vm6 = vmor %vm2285_vm5, %vm2286_vm4 }
 0x15c   :  { %v2281_v49 = vmul.f32 %v4159_v58, %v2280_v33 }
 0x15e   :  { %v2282_v45 = vmul.f32 0.5, %v2281_v49 }
 0x160   :  { %v2283_v39 = vsub.f32 1.5, %v2282_v45 }
 0x162   :  { %v2284_v1 = vmul.f32 %v4159_v58, %v2283_v39 }
 0x163   :  { %v2047_v54 = vpop.f32.mrf.mxu0 }
 0x164   :  { %v2048_v60 = vadd.f32 %v2047_v54, %v2035_v32  ;;  %v2288_v35 = vsel %vm2287_vm6, %v4159_v58, %v2284_v1 }
 0x165   :  { %v2310_v40 = vmul.f32 %v2288_v35, %v2230_v20  ;;  %v4130_v20 = vld [vmem:[#allocation12 + $0xa8] sm:$0xff] }
 0x166   :  { %v2060_v2 = vpop.f32.mrf.mxu1  ;;  %2637 = vmatpush.bf16.msra.mxu2 %v4130_v20 }
 0x167   :  { %v2061_v7 = vadd.f32 %v2060_v2, %v2048_v60  ;;  %v2324_v27 = vmul.f32 %v2316_v63, %v2310_v40 }
 0x169   :  { %v2338_v19 = vadd.f32 %v2330_v6, %v2324_v27 }
 0x16a   :  { %2638 = vmatpush.bf16.msra.mxu2 %v4129_v25 }
 0x16b   :  { %v2049_v31 = vpop.f32.mrf.mxu0  ;;  %v2342_v41 = vmax.f32 %v2338_v19, 0.0 }
 0x16c   :  { %v2073_v15 = vpop.f32.mrf.mxu2 }
 0x16d   :  { %v2074_v14 = vadd.f32 %v2073_v15, %v2061_v7  ;;  %v2086_v18 = vpop.f32.mrf.mxu3  ;;  %v2346_v3 = vpack.c.bf16 %v2342_v41, %v2342_v41  ;;  %v2317_v7 = vperm.slane %v4829_v36, 2  ;;  %v2331_v15 = vperm.slane %v4834_v47, 2 }
 0x16e   :  { %v2062_v37 = vpop.f32.mrf.mxu1  ;;  %2639 = vmatpush.bf16.msra.mxu2 %v4128_v17  ;;  %v4136_v17 = vld [vmem:[#allocation12 + $0xd8] sm:$0xff] }
 0x16f   :  { %v2087_v56 = vadd.f32 %v2086_v18, %v2074_v14  ;;  %2630 = vmatmul.bf16.vlgmr.msra.gmra.mxu1 %v2346_v3 }
 0x171   :  { %v2206_v21 = vrot.slane %v2087_v56, 4 }
 0x172   :  { %2640 = vmatpush.bf16.msra.mxu2 %v4127_v43  ;;  %v4135_v43 = vld [vmem:[#allocation12 + $0xd0] sm:$0xff] }
 0x173   :  { %v2207_v5 = vadd.f32 %v2206_v21, %v2087_v56 }
 0x174   :  { %v2075_v9 = vpop.f32.mrf.mxu2 }
 0x175   :  { %v2208_v29 = vrot.slane %v2207_v5, 2  ;;  %v2088_v11 = vpop.f32.mrf.mxu3 }
 0x176   :  { %2641 = vmatpush.bf16.msra.mxu2 %v4126_v26 }
 0x177   :  { %v2209_v62 = vadd.f32 %v2208_v29, %v2207_v5 }
 0x179   :  { %v2210_v12 = vrot.slane %v2209_v62, 1 }
 0x17a   :  { %2642 = vmatpush.bf16.msra.mxu2 %v4125_v28 }
 0x17b   :  { %v2211_v34 = vadd.f32 %v2210_v12, %v2209_v62  ;;  %v4140_v62 = vld [vmem:[#allocation12 + $0xf8] sm:$0xff] }
 0x17c   :  { %2648 = vmatpush.bf16.msra.mxu3 %v4140_v62 }
 0x17d   :  { %v2227_v30 = vmul.f32 %v4813_v44, %v2211_v34  ;;  %v4139_v34 = vld [vmem:[#allocation12 + $0xf0] sm:$0xff] }
 0x17f   :  { %v2231_v42 = vsub.f32 %v2087_v56, %v2227_v30 }
 0x180   :  { %2649 = vmatpush.bf16.msra.mxu3 %v4139_v34 }
 0x181   :  { %v2235_v16 = vmul.f32 %v2231_v42, %v2231_v42 }
 0x183   :  { %v2099_v0 = vpop.f32.mrf.mxu0  ;;  %v2249_v48 = vrot.slane %v2235_v16, 4 }
 0x185   :  { %v2250_v55 = vadd.f32 %v2249_v48, %v2235_v16 }
 0x186   :  { %v2112_v38 = vpop.f32.mrf.mxu1 }
 0x187   :  { %v2251_v46 = vrot.slane %v2250_v55, 2  ;;  %v2113_v57 = vadd.f32 %v2112_v38, %v2099_v0  ;;  %v4137_v0 = vld [vmem:[#allocation12 + $0xe0] sm:$0xff] }
 0x189   :  { %v2252_v8 = vadd.f32 %v2251_v46, %v2250_v55 }
 0x18b   :  { %v2101_v59 = vpop.f32.mrf.mxu0  ;;  %v2253_v4 = vrot.slane %v2252_v8, 1 }
 0x18c   :  { %v2125_v50 = vpop.f32.mrf.mxu2 }
 0x18d   :  { %v2138_v51 = vpop.f32.mrf.mxu3  ;;  %v2254_v10 = vadd.f32 %v2253_v4, %v2252_v8  ;;  %v2126_v49 = vadd.f32 %v2125_v50, %v2113_v57 }
 0x18e   :  { %v2114_v22 = vpop.f32.mrf.mxu1 }
 0x18f   :  { %v2263_v53 = vmul.f32 %v2254_v10, %v4813_v44  ;;  %v2139_v39 = vadd.f32 %v2138_v51, %v2126_v49  ;;  %v4134_v51 = vld [vmem:[#allocation12 + $0xc8] sm:$0xff]  ;;  %v4133_v22 = vld [vmem:[#allocation12 + $0xc0] sm:$0xff] }
 0x191   :  { %v2267_v24 = vadd.f32 1e-05, %v2263_v53 }
 0x193   :  { %4160 = vrsqrt.f32 %v2267_v24  ;;  %vm2295_vm8 = vweird.f32 %v2267_v24 }
 0x194   :  { %v2127_v52 = vpop.f32.mrf.mxu2 }
 0x195   :  { %v2140_v13 = vpop.f32.mrf.mxu3 }
 0x199   :  { %v4161_v58 = vpop.eup %4160 }
 0x19a   :  { %v2290_v33 = vmul.f32 %v4161_v58, %v2267_v24  ;;  %vm2296_vm7 = vweird.f32 %v4161_v58 }
 0x19b   :  { %vm2297_vm9 = vmor %vm2295_vm8, %vm2296_vm7 }
 0x19c   :  { %v2291_v32 = vmul.f32 %v4161_v58, %v2290_v33 }
 0x19e   :  { %v2292_v45 = vmul.f32 0.5, %v2291_v32 }
 0x1a0   :  { %v2293_v1 = vsub.f32 1.5, %v2292_v45 }
 0x1a2   :  { %v2294_v63 = vmul.f32 %v4161_v58, %v2293_v1 }
 0x1a3   :  { %v2151_v54 = vpop.f32.mrf.mxu0 }
 0x1a4   :  { %v2152_v2 = vadd.f32 %v2151_v54, %v2139_v39  ;;  %v2298_v35 = vsel %vm2297_vm9, %v4161_v58, %v2294_v63  ;;  %v2318_v58 = vperm.slane %v4829_v36, 3 }
 0x1a5   :  { %v2164_v60 = vpop.f32.mrf.mxu1  ;;  %v2311_v40 = vmul.f32 %v2298_v35, %v2231_v42  ;;  %v4138_v42 = vld [vmem:[#allocation12 + $0xe8] sm:$0xff] }
 0x1a6   :  { %v2165_v6 = vadd.f32 %v2164_v60, %v2152_v2  ;;  %2650 = vmatpush.bf16.msra.mxu3 %v4138_v42  ;;  %v4153_v60 = vld [vmem:[%s4864_s7] ss:$0 sm:$0xff] }
 0x1a7   :  { %v2325_v18 = vmul.f32 %v2317_v7, %v2311_v40 }
 0x1a9   :  { %v2339_v21 = vadd.f32 %v2331_v15, %v2325_v18 }
 0x1aa   :  { %2651 = vmatpush.bf16.msra.mxu3 %v4137_v0 }
 0x1ab   :  { %v2177_v27 = vpop.f32.mrf.mxu2  ;;  %v2153_v14 = vpop.f32.mrf.mxu0  ;;  %v2343_v5 = vmax.f32 %v2339_v21, 0.0 }
 0x1ac   :  { %v2178_v31 = vadd.f32 %v2177_v27, %v2165_v6 }
 0x1ad   :  { %v2190_v56 = vpop.f32.mrf.mxu3  ;;  %v2166_v19 = vpop.f32.mrf.mxu1  ;;  %v2347_v9 = vpack.c.bf16 %v2343_v5, %v2343_v5 }
 0x1ae   :  { %v2191_v37 = vadd.f32 %v2190_v56, %v2178_v31  ;;  %2652 = vmatpush.bf16.msra.mxu3 %v4136_v17 }
 0x1af   :  { %2643 = vmatmul.bf16.vlgmr.msra.gmra.mxu2 %v2347_v9 }
 0x1b0   :  { %v2212_v41 = vrot.slane %v2191_v37, 4 }
 0x1b2   :  { %v2213_v3 = vadd.f32 %v2212_v41, %v2191_v37  ;;  %2653 = vmatpush.bf16.msra.mxu3 %v4135_v43 }
 0x1b3   :  { %v2179_v29 = vpop.f32.mrf.mxu2 }
 0x1b4   :  { %v2214_v11 = vrot.slane %v2213_v3, 2 }
 0x1b5   :  { %v2192_v61 = vpop.f32.mrf.mxu3 }
 0x1b6   :  { %v2215_v12 = vadd.f32 %v2214_v11, %v2213_v3  ;;  %2654 = vmatpush.bf16.msra.mxu3 %v4134_v51 }
 0x1b8   :  { %v2216_v23 = vrot.slane %v2215_v12, 1 }
 0x1ba   :  { %v2217_v30 = vadd.f32 %v2216_v23, %v2215_v12  ;;  %2655 = vmatpush.bf16.msra.mxu3 %v4133_v22 }
 0x1bc   :  { %v2228_v20 = vmul.f32 %v4813_v44, %v2217_v30 }
 0x1be   :  { %v2232_v16 = vsub.f32 %v2191_v37, %v2228_v20 }
 0x1c0   :  { %v2236_v25 = vmul.f32 %v2232_v16, %v2232_v16 }
 0x1c2   :  { %v2255_v48 = vrot.slane %v2236_v25, 4 }
 0x1c3   :  { %v2618_v38 = vpop.f32.mrf.mxu0 }
 0x1c4   :  { %v2256_v55 = vadd.f32 %v2255_v48, %v2236_v25  ;;  %v2619_v1 = vadd.f32 %v4153_v60, %v2618_v38 }
 0x1c6   :  { %v2257_v46 = vrot.slane %v2256_v55, 2 }
 0x1c8   :  { %v2258_v8 = vadd.f32 %v2257_v46, %v2256_v55 }
 0x1ca   :  { %v2259_v50 = vrot.slane %v2258_v8, 1 }
 0x1cb   :  { %v2620_v4 = vpop.f32.mrf.mxu0 }
 0x1cc   :  { %v2260_v59 = vadd.f32 %v2259_v50, %v2258_v8 }
 0x1ce   :  { %v2264_v10 = vmul.f32 %v2260_v59, %v4813_v44  ;;  %v2332_v44 = vperm.slane %v4834_v47, 3 }
 0x1d0   :  { %v2268_v26 = vadd.f32 1e-05, %v2264_v10 }
 0x1d2   :  { %4162 = vrsqrt.f32 %v2268_v26  ;;  %vm2305_vm11 = vweird.f32 %v2268_v26 }
 0x1d8   :  { %v4163_v53 = vpop.eup %4162 }
 0x1d9   :  { %v2300_v24 = vmul.f32 %v4163_v53, %v2268_v26  ;;  %vm2306_vm10 = vweird.f32 %v4163_v53 }
 0x1da   :  { %vm2307_vm12 = vmor %vm2305_vm11, %vm2306_vm10 }
 0x1db   :  { %v2301_v52 = vmul.f32 %v4163_v53, %v2300_v24 }
 0x1dd   :  { %v2302_v28 = vmul.f32 0.5, %v2301_v52 }
 0x1df   :  { %v2303_v13 = vsub.f32 1.5, %v2302_v28 }
 0x1e1   :  { %v2304_v57 = vmul.f32 %v4163_v53, %v2303_v13 }
 0x1e3   :  { %v2308_v33 = vsel %vm2307_vm12, %v4163_v53, %v2304_v57 }
 0x1e4   :  { %v2312_v49 = vmul.f32 %v2308_v33, %v2232_v16 }
 0x1e6   :  { %v2326_v32 = vmul.f32 %v2318_v58, %v2312_v49 }
 0x1e8   :  { %v2340_v45 = vadd.f32 %v2332_v44, %v2326_v32 }
 0x1ea   :  { %v2344_v54 = vmax.f32 %v2340_v45, 0.0 }
 0x1ec   :  { %v2348_v39 = vpack.c.bf16 %v2344_v54, %v2344_v54  ;;  %v2631_v2 = vpop.f32.mrf.mxu1 }
 0x1ed   :  { %v2632_v63 = vadd.f32 %v2631_v2, %v2619_v1 }
 0x1ee   :  { %2656 = vmatmul.bf16.vlgmr.msra.gmra.mxu3 %v2348_v39 }
 0x1f4   :  { %v2633_v7 = vpop.f32.mrf.mxu1 }
 0x232   :  { %v2644_v35 = vpop.f32.mrf.mxu2 }
 0x233   :  { %v2645_v36 = vadd.f32 %v2644_v35, %v2632_v63 }
 0x23a   :  { %v2646_v40 = vpop.f32.mrf.mxu2 }
 0x271   :  { %v2657_v47 = vpop.f32.mrf.mxu3 }
 0x272   :  { %v2658_v6 = vadd.f32 %v2657_v47, %v2645_v36 }
 0x274   :  { %2661 = vst [vmem:[#allocation14] sm:$0xff] %v2658_v6 }
 0x275   :  { %2672 = dma.vmem_to_hbm [thread:$0]  %s2668_s2, 128, %s2670_s10, [#allocation4]  }
 0x279   :  { %v2659_v15 = vpop.f32.mrf.mxu3 }
 0x27a   :  { %4318 = dma.done.wait [#allocation4], 128  }
 0x27b   :  { %4319 = vsyncadd [#allocation4], 4294967168 }
 0x27c   :  { %2677 = vsyncpa [#allocation3], 1 }
 0x27d   :  { %2678 = vsyncpa [#allocation10], 1 }
 0x27e   :  { %2679 = vsyncpa [#allocation13], 1 }
 0x27f   :  { %2680 = vsyncpa [#allocation4], 1 }
 0x280   :  { %2681 = vsyncpa [#allocation5], 1 }
 0x281   :  { %2682 = vsyncpa [#allocation8], 1 }

</bundles_post_ra>
